<compile_context>
chip_gen: v6e
topology: v6e:2x2x1
jax: 0.10.0
libtpu: 0.0.40
codegen_flags: <defaults>
</compile_context>

<pallas_src>
import functools

import jax
import jax.numpy as jnp
from jax.experimental import pallas as pl
from jax.experimental.pallas import tpu as pltpu

_NEG_BIG = -1e30  # "minus infinity" stand-in that stays NaN-safe under subtraction


def _cdiv(a, b):
    return (a + b - 1) // b


def _vmem_limit_bytes():
    """Scoped VMEM limit derived from the chip's capacity (v7x: 64 MiB/TC)."""
    try:
        cap = int(pltpu.get_tpu_info().vmem_capacity_bytes)
    except Exception:
        cap = 64 * 1024 * 1024  # conservative: v7x per-TensorCore VMEM
    return max(32 * 1024 * 1024, min(int(cap * 0.8), 110 * 1024 * 1024))


def _pick_t_tile(C, T, x_itemsize, vmem_limit):
    """Largest T tile (multiple of 128 lanes) that keeps the live set in VMEM."""
    budget = vmem_limit - (6 << 20)  # headroom for weights / compiler scratch
    # per T-lane live bytes: 2x double-buffered x block + bf16 matmul copy +
    # f32 intermediates (h, e, p, px) of the streaming loop.
    per_t = C * (2 * x_itemsize + 2 + 24)
    fixed = 4 * C * 128 * 4  # (C, 128) f32 accumulators
    tt = (budget - fixed) // max(per_t, 1)
    tt = int(max(128, min(tt, 1024)))
    tt = (tt // 128) * 128
    if T <= tt:
        return int(T)  # single block: lane dim equals the full T extent
    return tt


def _astp_kernel(x_ref, w1_ref, b1_ref, w2_ref, b2_ref,
                 m_out, l_out, s1_out, s2_out,
                 m_acc, l_acc, s1_acc, s2_acc,
                 *, t_total, t_tile, tiles_per_split, lane_w, ragged, mm_dtype):
    t_idx = pl.program_id(2)

    @pl.when(t_idx == 0)
    def _init():
        m_acc[...] = jnp.full_like(m_acc, _NEG_BIG)
        l_acc[...] = jnp.zeros_like(l_acc)
        s1_acc[...] = jnp.zeros_like(s1_acc)
        s2_acc[...] = jnp.zeros_like(s2_acc)

    # x block in native layout: channels on sublanes, time on lanes.
    x = x_ref[0]                                             # (C, tt)

    if ragged:
        # Global T position of each lane of this tile (split-aware).
        t_start = (pl.program_id(0) * tiles_per_split + t_idx) * t_tile
        pos = jax.lax.broadcasted_iota(jnp.int32, (1, t_tile), 1) + t_start
        valid = pos < t_total                                # (1, tt) bool
        # Out-of-bounds lanes may hold arbitrary HBM garbage (NaN/Inf):
        # select to zero rather than multiplying so 0*NaN cannot appear.
        x = jnp.where(valid, x, jnp.zeros_like(x))
        pmask = valid.astype(jnp.float32)                    # (1, tt) 0/1

    # Attention logits: two 1x1 convs == two MXU matmuls (bf16 operands by
    # default, f32 accumulation).
    xm = x.astype(mm_dtype)
    h = jnp.dot(w1_ref[...], xm, preferred_element_type=jnp.float32)   # (D, tt)
    h = jnp.tanh(h + b1_ref[0])                                        # + (D, 1)
    e = jnp.dot(w2_ref[...], h.astype(mm_dtype),
                preferred_element_type=jnp.float32) + b2_ref[...]      # (C, tt)

    # Per-lane-slot online softmax: each of the `lane_w` lane positions keeps
    # its own (max, sum, sum p*x, sum p*x*x) so the hot loop needs no cross-
    # lane XLU reductions at all; slots are merged once in the finalize.
    nblk = t_tile // lane_w
    e_max = e[:, 0:lane_w]
    for j in range(1, nblk):
        e_max = jnp.maximum(e_max, e[:, j * lane_w:(j + 1) * lane_w])
    m_prev = m_acc[...]
    m_new = jnp.maximum(m_prev, e_max)                       # (C, lane_w)
    corr = jnp.exp(m_prev - m_new)
    l = corr * l_acc[...]
    s1 = corr * s1_acc[...]
    s2 = corr * s2_acc[...]
    for j in range(nblk):
        sl = slice(j * lane_w, (j + 1) * lane_w)
        p = jnp.exp(e[:, sl] - m_new)                        # (C, lane_w) f32
        if ragged:
            p = p * pmask[:, sl]                             # cheap 0/1 lane mask
        xj = x[:, sl].astype(jnp.float32)
        px = p * xj
        l = l + p
        s1 = s1 + px
        s2 = s2 + px * xj
    m_acc[...] = m_new
    l_acc[...] = l
    s1_acc[...] = s1
    s2_acc[...] = s2

    @pl.when(t_idx == pl.num_programs(2) - 1)
    def _finalize():
        # Merge the lane slots (cold path, once per (split, batch)).
        m_star = jnp.max(m_new, axis=1, keepdims=True)       # (C, 1)
        w = jnp.exp(m_new - m_star)
        m_out[0, 0] = m_star
        l_out[0, 0] = jnp.sum(w * l, axis=1, keepdims=True)
        s1_out[0, 0] = jnp.sum(w * s1, axis=1, keepdims=True)
        s2_out[0, 0] = jnp.sum(w * s2, axis=1, keepdims=True)


def astp(x, w1, b1, w2, b2, *, global_context_att=False,
         t_tile=None, t_splits=None, matmul_dtype=jnp.bfloat16):
    """Attentive statistics pooling (forward of the PyTorch ASTP module).

    x  : (B, C, T) or (B, C0, F, T) (reshaped to (B, C0*F, T) like the module)
    w1 : (D, C)  (or (D, 3C) if global_context_att), b1: (D,)
    w2 : (C, D), b2: (C,)
    returns (B, 2C) = concat([weighted mean, weighted std], axis=1)
    """
    if x.ndim == 4:
        x = x.reshape(x.shape[0], x.shape[1] * x.shape[2], x.shape[3])
    assert x.ndim == 3
    B, C, T = map(int, x.shape)
    D = int(w1.shape[0])
    mm_dtype = jnp.dtype(matmul_dtype)

    # --- fold the time-invariant global-context channels into a per-batch bias
    #     W1 @ [x; mu; sigma] + b1 = W1[:, :C] @ x + (b1 + W1[:,C:2C]@mu + W1[:,2C:]@sigma)
    if global_context_att:
        assert w1.shape[1] == 3 * C
        # f32-accumulated reductions directly on native-dtype x (no f32 copy of x).
        ex = jnp.mean(x, axis=-1, dtype=jnp.float32)                     # (B, C)
        ex2 = jnp.mean(jnp.square(x), axis=-1, dtype=jnp.float32)        # (B, C)
        var = jnp.maximum(ex2 - ex * ex, 0.0) * (T / max(T - 1, 1))      # unbiased
        ctx_std = jnp.sqrt(var + 1e-10)
        w1_x, w1_m, w1_s = w1[:, :C], w1[:, C:2 * C], w1[:, 2 * C:]
        b1_eff = (b1.astype(jnp.float32)[None, :]
                  + ex @ w1_m.astype(jnp.float32).T
                  + ctx_std @ w1_s.astype(jnp.float32).T)                # (B, D)
    else:
        assert w1.shape[1] == C
        w1_x = w1
        b1_eff = jnp.broadcast_to(b1.astype(jnp.float32)[None, :], (B, D))

    vmem_limit = _vmem_limit_bytes()

    # --- T tiling on the lane axis; x stays (B, C, T): no HBM transpose / pad.
    if t_tile is None:
        tt = _pick_t_tile(C, T, jnp.dtype(x.dtype).itemsize, vmem_limit)
    else:
        tt = int(t_tile)
        if tt >= T:
            tt = T                                  # single full-T block
        else:
            tt = max(128, (tt // 128) * 128)        # lane dim must be 128-aligned
    n_t_blocks = _cdiv(T, tt)

    # --- optional split of T across a leading "parallel" grid axis so both
    #     v7x TensorCores stay busy when B == 1 (harmless on 1-TC chips).
    if t_splits is None:
        n_split = 2 if B < 2 else 1
    else:
        n_split = int(t_splits)
    n_split = max(1, min(n_split, n_t_blocks))
    tpp = _cdiv(n_t_blocks, n_split)                # T tiles handled per split
    ragged = (n_split * tpp * tt) != T
    lane_w = 128 if tt % 128 == 0 else tt

    w1k = w1_x.astype(mm_dtype)                     # (D, C) resident
    w2k = w2.astype(mm_dtype)                       # (C, D) resident
    b1k = b1_eff.reshape(B, D, 1)                   # per-batch effective bias, f32
    b2k = b2.astype(jnp.float32).reshape(C, 1)

    kernel = functools.partial(
        _astp_kernel, t_total=T, t_tile=tt, tiles_per_split=tpp,
        lane_w=lane_w, ragged=ragged, mm_dtype=mm_dtype)

    stat_shape = jax.ShapeDtypeStruct((n_split, B, C, 1), jnp.float32)
    last_blk = n_t_blocks - 1

    def x_index(s, b, t):
        # Clamp so padded tail tiles of the last split never DMA out of bounds;
        # their lanes are fully masked in-kernel.
        return (b, 0, jnp.minimum(s * tpp + t, last_blk))

    m_p, l_p, s1_p, s2_p = pl.pallas_call(
        kernel,
        out_shape=(stat_shape,) * 4,
        grid=(n_split, B, tpp),
        in_specs=[
            pl.BlockSpec((1, C, tt), x_index),                    # x: streamed once
            pl.BlockSpec((D, C), lambda s, b, t: (0, 0)),         # w1: resident
            pl.BlockSpec((1, D, 1), lambda s, b, t: (b, 0, 0)),   # per-batch bias
            pl.BlockSpec((C, D), lambda s, b, t: (0, 0)),         # w2: resident
            pl.BlockSpec((C, 1), lambda s, b, t: (0, 0)),         # b2: resident
        ],
        out_specs=tuple(
            pl.BlockSpec((1, 1, C, 1), lambda s, b, t: (s, b, 0, 0))
            for _ in range(4)),
        scratch_shapes=[pltpu.VMEM((C, lane_w), jnp.float32) for _ in range(4)],
        compiler_params=pltpu.CompilerParams(
            dimension_semantics=("parallel", "parallel", "arbitrary"),
            vmem_limit_bytes=vmem_limit),
    )(x, w1k, b1k, w2k, b2k)

    # --- merge split partials and finalize (tiny O(B*C) f32 math in plain JAX)
    m_p, l_p, s1_p, s2_p = (a[..., 0] for a in (m_p, l_p, s1_p, s2_p))
    m_star = jnp.max(m_p, axis=0)                   # (B, C)
    w = jnp.exp(m_p - m_star[None])
    l = jnp.sum(w * l_p, axis=0)
    s1 = jnp.sum(w * s1_p, axis=0)
    s2 = jnp.sum(w * s2_p, axis=0)
    mean = s1 / l
    var = s2 / l - mean * mean
    std = jnp.sqrt(jnp.maximum(var, 1e-10))
    return jnp.concatenate([mean, std], axis=1).astype(x.dtype)


def astp_reference(x, w1, b1, w2, b2, global_context_att=False):
    """Plain-JAX reference reproducing the PyTorch ASTP.forward (f32 matmuls)."""
    if x.ndim == 4:
        x = x.reshape(x.shape[0], x.shape[1] * x.shape[2], x.shape[3])
    if global_context_att:
        ctx_mean = jnp.mean(x, axis=-1, keepdims=True)
        ctx_std = jnp.sqrt(jnp.var(x, axis=-1, keepdims=True, ddof=1) + 1e-10)
        x_in = jnp.concatenate(
            [x, jnp.broadcast_to(ctx_mean, x.shape),
             jnp.broadcast_to(ctx_std, x.shape)], axis=1)
    else:
        x_in = x
    alpha = jnp.tanh(jnp.einsum('dc,bct->bdt', w1, x_in, precision='highest')
                     + b1[None, :, None])
    logits = (jnp.einsum('cd,bdt->bct', w2, alpha, precision='highest')
              + b2[None, :, None])
    alpha = jax.nn.softmax(logits, axis=2)
    mean = jnp.sum(alpha * x, axis=2)
    var = jnp.sum(alpha * x ** 2, axis=2) - mean ** 2
    std = jnp.sqrt(jnp.maximum(var, 1e-10))
    return jnp.concatenate([mean, std], axis=1)


if __name__ == "__main__":
    B, in_dim, T = 2, 128, 300
    bottleneck = 32

    key = jax.random.PRNGKey(0)
    kx, k1, k2, k3, k4, k5, k6 = jax.random.split(key, 7)

    x = jax.random.normal(kx, (B, in_dim, T), dtype=jnp.float32)

    # Conv1d(kernel_size=1) parameters with the k=1 axis squeezed.
    bnd1 = 1.0 / (in_dim ** 0.5)
    w1 = jax.random.uniform(k1, (bottleneck, in_dim), jnp.float32, -bnd1, bnd1)
    b1 = jax.random.uniform(k2, (bottleneck,), jnp.float32, -bnd1, bnd1)
    bnd2 = 1.0 / (bottleneck ** 0.5)
    w2 = jax.random.uniform(k3, (in_dim, bottleneck), jnp.float32, -bnd2, bnd2)
    b2 = jax.random.uniform(k4, (in_dim,), jnp.float32, -bnd2, bnd2)

    ref = astp_reference(x, w1, b1, w2, b2)

    # (1) f32 matmul path, multi-tile T with a ragged last tile (300 = 2*128 + 44).
    #     Tolerance allows for MXU f32 pass decomposition vs the XLA reference.
    out = jax.block_until_ready(
        astp(x, w1, b1, w2, b2, t_tile=128, matmul_dtype=jnp.float32))
    assert out.shape == (B, 2 * in_dim)
    assert jnp.allclose(out, ref, atol=3e-3, rtol=3e-3), "mismatch (f32, tiled)"

    # (2) default bf16 MXU path (attention logits in bf16, stats accumulated f32).
    out_bf = jax.block_until_ready(astp(x, w1, b1, w2, b2, t_tile=128))
    assert jnp.allclose(out_bf, ref, atol=3e-2, rtol=3e-2), "mismatch (bf16 matmul)"

    # (3) global-context attention + explicit 2-way T split (v7x megacore path;
    #     exercises the clamped/masked duplicate tail tile).
    bnd1g = 1.0 / ((3 * in_dim) ** 0.5)
    w1g = jax.random.uniform(k5, (bottleneck, 3 * in_dim), jnp.float32,
                             -bnd1g, bnd1g)
    b1g = jax.random.uniform(k6, (bottleneck,), jnp.float32, -bnd1g, bnd1g)
    outg = jax.block_until_ready(
        astp(x, w1g, b1g, w2, b2, global_context_att=True,
             t_tile=128, t_splits=2, matmul_dtype=jnp.float32))
    refg = astp_reference(x, w1g, b1g, w2, b2, global_context_att=True)
    assert jnp.allclose(outg, refg, atol=3e-3, rtol=3e-3), "mismatch (global ctx)"

    # (4) 4-D (B, C, F, T) resnet-style input, auto tiling (single full-T tile).
    x4 = x.reshape(B, 4, in_dim // 4, T)
    out4 = jax.block_until_ready(astp(x4, w1, b1, w2, b2,
                                      matmul_dtype=jnp.float32))
    assert jnp.allclose(out4, ref, atol=3e-3, rtol=3e-3), "mismatch (4-D input)"

    print("KERNEL_OK")
</pallas_src>

<mosaic_0001>
module attributes {stable_mosaic.version = 11 : i64} {
  func.func @_astp_kernel(%arg0: i32, %arg1: i32, %arg2: i32, %arg3: memref<1x128x128xf32, #tpu.memory_space<vmem>>, %arg4: memref<32x128xf32, #tpu.memory_space<vmem>>, %arg5: memref<1x32x1xf32, #tpu.memory_space<vmem>>, %arg6: memref<128x32xf32, #tpu.memory_space<vmem>>, %arg7: memref<128x1xf32, #tpu.memory_space<vmem>>, %arg8: memref<1x1x128x1xf32, #tpu.memory_space<vmem>>, %arg9: memref<1x1x128x1xf32, #tpu.memory_space<vmem>>, %arg10: memref<1x1x128x1xf32, #tpu.memory_space<vmem>>, %arg11: memref<1x1x128x1xf32, #tpu.memory_space<vmem>>, %arg12: memref<128x128xf32, #tpu.memory_space<vmem>>, %arg13: memref<128x128xf32, #tpu.memory_space<vmem>>, %arg14: memref<128x128xf32, #tpu.memory_space<vmem>>, %arg15: memref<128x128xf32, #tpu.memory_space<vmem>>) attributes {dimension_semantics = [#tpu.dimension_semantics<parallel>, #tpu.dimension_semantics<parallel>, #tpu.dimension_semantics<arbitrary>], iteration_bounds = array<i64: 1, 2, 3>, scalar_prefetch = 0 : i64, scratch_operands = 4 : i64, tpu.core_type = #tpu.core_type<tc>, window_params = [{transform_indices = @transform_0, window_bounds = array<i64: 1, 128, 128>}, {pipeline_mode = #tpu.pipeline_mode<synchronous>, transform_indices = @transform_1, window_bounds = array<i64: 32, 128>}, {transform_indices = @transform_2, window_bounds = array<i64: 1, 32, 1>}, {pipeline_mode = #tpu.pipeline_mode<synchronous>, transform_indices = @transform_3, window_bounds = array<i64: 128, 32>}, {pipeline_mode = #tpu.pipeline_mode<synchronous>, transform_indices = @transform_4, window_bounds = array<i64: 128, 1>}, {transform_indices = @transform_5, window_bounds = array<i64: 1, 1, 128, 1>}, {transform_indices = @transform_6, window_bounds = array<i64: 1, 1, 128, 1>}, {transform_indices = @transform_7, window_bounds = array<i64: 1, 1, 128, 1>}, {transform_indices = @transform_8, window_bounds = array<i64: 1, 1, 128, 1>}]} {
    %c0_i32 = arith.constant 0 : i32
    %0 = arith.cmpi eq, %arg2, %c0_i32 : i32
    %1 = arith.extui %0 : i1 to i32
    %c0_i32_0 = arith.constant 0 : i32
    %2 = arith.cmpi ne, %1, %c0_i32_0 : i32
    scf.if %2 {
      %cst_31 = arith.constant -1.000000e+30 : f32
      %57 = vector.broadcast %cst_31 : f32 to vector<128x128xf32>
      %c0_32 = arith.constant 0 : index
      %c0_33 = arith.constant 0 : index
      %58 = vector.load %arg12[%c0_32, %c0_33] : memref<128x128xf32, #tpu.memory_space<vmem>>, vector<128x128xf32>
      tpu.vector_store %arg12[%c0_32, %c0_33], %57 {strides = array<i32>} : memref<128x128xf32, #tpu.memory_space<vmem>>, vector<128x128xf32>,
      %cst_34 = arith.constant 0.000000e+00 : f32
      %59 = vector.broadcast %cst_34 : f32 to vector<128x128xf32>
      %c0_35 = arith.constant 0 : index
      %c0_36 = arith.constant 0 : index
      %60 = vector.load %arg13[%c0_35, %c0_36] : memref<128x128xf32, #tpu.memory_space<vmem>>, vector<128x128xf32>
      tpu.vector_store %arg13[%c0_35, %c0_36], %59 {strides = array<i32>} : memref<128x128xf32, #tpu.memory_space<vmem>>, vector<128x128xf32>,
      %cst_37 = arith.constant 0.000000e+00 : f32
      %61 = vector.broadcast %cst_37 : f32 to vector<128x128xf32>
      %c0_38 = arith.constant 0 : index
      %c0_39 = arith.constant 0 : index
      %62 = vector.load %arg14[%c0_38, %c0_39] : memref<128x128xf32, #tpu.memory_space<vmem>>, vector<128x128xf32>
      tpu.vector_store %arg14[%c0_38, %c0_39], %61 {strides = array<i32>} : memref<128x128xf32, #tpu.memory_space<vmem>>, vector<128x128xf32>,
      %cst_40 = arith.constant 0.000000e+00 : f32
      %63 = vector.broadcast %cst_40 : f32 to vector<128x128xf32>
      %c0_41 = arith.constant 0 : index
      %c0_42 = arith.constant 0 : index
      %64 = vector.load %arg15[%c0_41, %c0_42] : memref<128x128xf32, #tpu.memory_space<vmem>>, vector<128x128xf32>
      tpu.vector_store %arg15[%c0_41, %c0_42], %63 {strides = array<i32>} : memref<128x128xf32, #tpu.memory_space<vmem>>, vector<128x128xf32>,
    } else {
    }
    %c0 = arith.constant 0 : index
    %c0_1 = arith.constant 0 : index
    %c0_2 = arith.constant 0 : index
    %3 = vector.load %arg3[%c0, %c0_1, %c0_2] : memref<1x128x128xf32, #tpu.memory_space<vmem>>, vector<1x128x128xf32>
    %4 = vector.shape_cast %3 : vector<1x128x128xf32> to vector<128x128xf32>
    %c3_i32 = arith.constant 3 : i32
    %5 = arith.muli %arg0, %c3_i32 : i32
    %6 = arith.addi %5, %arg2 : i32
    %c128_i32 = arith.constant 128 : i32
    %7 = arith.muli %6, %c128_i32 : i32
    %8 = tpu.iota {dimensions = array<i32: 1>} : vector<1x128xi32>
    %9 = vector.broadcast %7 : i32 to vector<1x128xi32>
    %10 = arith.addi %8, %9 : vector<1x128xi32>
    %c300_i32 = arith.constant 300 : i32
    %11 = vector.broadcast %c300_i32 : i32 to vector<1x128xi32>
    %12 = arith.cmpi slt, %10, %11 : vector<1x128xi32>
    %cst = arith.constant 0.000000e+00 : f32
    %13 = vector.broadcast %cst : f32 to vector<128x128xf32>
    %14 = vector.shape_cast %12 : vector<1x128xi1> to vector<1x128xi1>
    %15 = vector.broadcast %14 : vector<1x128xi1> to vector<128x128xi1>
    %16 = arith.select %15, %4, %13 : vector<128x128xi1>, vector<128x128xf32>
    %17 = arith.extui %12 : vector<1x128xi1> to vector<1x128xi32>
    %18 = arith.sitofp %17 : vector<1x128xi32> to vector<1x128xf32>
    %c0_3 = arith.constant 0 : index
    %c0_4 = arith.constant 0 : index
    %19 = vector.load %arg4[%c0_3, %c0_4] : memref<32x128xf32, #tpu.memory_space<vmem>>, vector<32x128xf32>
    %cst_5 = arith.constant dense<0.000000e+00> : vector<32x128xf32>
    %20 = tpu.matmul %19, %16, %cst_5 {dimension_numbers = #tpu.dot_dimension_numbers<[1], [0], [0], [1], [0, 0, 1, 1], [], []>} : vector<32x128xf32>, vector<128x128xf32>, vector<32x128xf32> -> vector<32x128xf32>
    %c0_6 = arith.constant 0 : index
    %c0_7 = arith.constant 0 : index
    %c0_8 = arith.constant 0 : index
    %21 = vector.load %arg5[%c0_6, %c0_7, %c0_8] : memref<1x32x1xf32, #tpu.memory_space<vmem>>, vector<1x32x1xf32>
    %22 = vector.shape_cast %21 : vector<1x32x1xf32> to vector<32x1xf32>
    %23 = vector.broadcast %22 : vector<32x1xf32> to vector<32x128xf32>
    %24 = arith.addf %20, %23 : vector<32x128xf32>
    %25 = math.tanh %24 : vector<32x128xf32>
    %c0_9 = arith.constant 0 : index
    %c0_10 = arith.constant 0 : index
    %26 = vector.load %arg6[%c0_9, %c0_10] : memref<128x32xf32, #tpu.memory_space<vmem>>, vector<128x32xf32>
    %cst_11 = arith.constant dense<0.000000e+00> : vector<128x128xf32>
    %27 = tpu.matmul %26, %25, %cst_11 {dimension_numbers = #tpu.dot_dimension_numbers<[1], [0], [0], [1], [0, 0, 1, 1], [], []>} : vector<128x32xf32>, vector<32x128xf32>, vector<128x128xf32> -> vector<128x128xf32>
    %c0_12 = arith.constant 0 : index
    %c0_13 = arith.constant 0 : index
    %28 = vector.load %arg7[%c0_12, %c0_13] : memref<128x1xf32, #tpu.memory_space<vmem>>, vector<128x1xf32>
    %29 = vector.broadcast %28 : vector<128x1xf32> to vector<128x128xf32>
    %30 = arith.addf %27, %29 : vector<128x128xf32>
    %c0_14 = arith.constant 0 : index
    %c0_15 = arith.constant 0 : index
    %31 = vector.load %arg12[%c0_14, %c0_15] : memref<128x128xf32, #tpu.memory_space<vmem>>, vector<128x128xf32>
    %32 = arith.maximumf %31, %30 : vector<128x128xf32>
    %33 = arith.subf %31, %32 : vector<128x128xf32>
    %34 = math.exp %33 : vector<128x128xf32>
    %c0_16 = arith.constant 0 : index
    %c0_17 = arith.constant 0 : index
    %35 = vector.load %arg13[%c0_16, %c0_17] : memref<128x128xf32, #tpu.memory_space<vmem>>, vector<128x128xf32>
    %36 = arith.mulf %34, %35 : vector<128x128xf32>
    %c0_18 = arith.constant 0 : index
    %c0_19 = arith.constant 0 : index
    %37 = vector.load %arg14[%c0_18, %c0_19] : memref<128x128xf32, #tpu.memory_space<vmem>>, vector<128x128xf32>
    %38 = arith.mulf %34, %37 : vector<128x128xf32>
    %c0_20 = arith.constant 0 : index
    %c0_21 = arith.constant 0 : index
    %39 = vector.load %arg15[%c0_20, %c0_21] : memref<128x128xf32, #tpu.memory_space<vmem>>, vector<128x128xf32>
    %40 = arith.mulf %34, %39 : vector<128x128xf32>
    %41 = arith.subf %30, %32 : vector<128x128xf32>
    %42 = math.exp %41 : vector<128x128xf32>
    %43 = vector.broadcast %18 : vector<1x128xf32> to vector<128x128xf32>
    %44 = arith.mulf %42, %43 : vector<128x128xf32>
    %45 = arith.mulf %44, %16 : vector<128x128xf32>
    %46 = arith.addf %36, %44 : vector<128x128xf32>
    %47 = arith.addf %38, %45 : vector<128x128xf32>
    %48 = arith.mulf %45, %16 : vector<128x128xf32>
    %49 = arith.addf %40, %48 : vector<128x128xf32>
    %c0_22 = arith.constant 0 : index
    %c0_23 = arith.constant 0 : index
    %50 = vector.load %arg12[%c0_22, %c0_23] : memref<128x128xf32, #tpu.memory_space<vmem>>, vector<128x128xf32>
    tpu.vector_store %arg12[%c0_22, %c0_23], %32 {strides = array<i32>} : memref<128x128xf32, #tpu.memory_space<vmem>>, vector<128x128xf32>,
    %c0_24 = arith.constant 0 : index
    %c0_25 = arith.constant 0 : index
    %51 = vector.load %arg13[%c0_24, %c0_25] : memref<128x128xf32, #tpu.memory_space<vmem>>, vector<128x128xf32>
    tpu.vector_store %arg13[%c0_24, %c0_25], %46 {strides = array<i32>} : memref<128x128xf32, #tpu.memory_space<vmem>>, vector<128x128xf32>,
    %c0_26 = arith.constant 0 : index
    %c0_27 = arith.constant 0 : index
    %52 = vector.load %arg14[%c0_26, %c0_27] : memref<128x128xf32, #tpu.memory_space<vmem>>, vector<128x128xf32>
    tpu.vector_store %arg14[%c0_26, %c0_27], %47 {strides = array<i32>} : memref<128x128xf32, #tpu.memory_space<vmem>>, vector<128x128xf32>,
    %c0_28 = arith.constant 0 : index
    %c0_29 = arith.constant 0 : index
    %53 = vector.load %arg15[%c0_28, %c0_29] : memref<128x128xf32, #tpu.memory_space<vmem>>, vector<128x128xf32>
    tpu.vector_store %arg15[%c0_28, %c0_29], %49 {strides = array<i32>} : memref<128x128xf32, #tpu.memory_space<vmem>>, vector<128x128xf32>,
    %c2_i32 = arith.constant 2 : i32
    %54 = arith.cmpi eq, %arg2, %c2_i32 : i32
    %55 = arith.extui %54 : i1 to i32
    %c0_i32_30 = arith.constant 0 : i32
    %56 = arith.cmpi ne, %55, %c0_i32_30 : i32
    scf.if %56 {
      %cst_31 = arith.constant dense<0xFF800000> : vector<128xf32>
      %57 = vector.multi_reduction <maximumf>, %32, %cst_31 [1] : vector<128x128xf32> to vector<128xf32>
      %58 = vector.shape_cast %57 : vector<128xf32> to vector<128x1xf32>
      %59 = vector.broadcast %58 : vector<128x1xf32> to vector<128x128xf32>
      %60 = arith.subf %32, %59 : vector<128x128xf32>
      %61 = math.exp %60 : vector<128x128xf32>
      %c0_32 = arith.constant 0 : index
      %c0_33 = arith.constant 0 : index
      %c0_34 = arith.constant 0 : index
      %c0_35 = arith.constant 0 : index
      %62 = vector.load %arg8[%c0_32, %c0_33, %c0_34, %c0_35] : memref<1x1x128x1xf32, #tpu.memory_space<vmem>>, vector<1x1x128x1xf32>
      %63 = vector.shape_cast %62 : vector<1x1x128x1xf32> to vector<128x1xf32>
      %64 = vector.shape_cast %58 : vector<128x1xf32> to vector<1x1x128x1xf32>
      tpu.vector_store %arg8[%c0_32, %c0_33, %c0_34, %c0_35], %64 {strides = array<i32>} : memref<1x1x128x1xf32, #tpu.memory_space<vmem>>, vector<1x1x128x1xf32>,
      %65 = arith.mulf %61, %46 : vector<128x128xf32>
      %cst_36 = arith.constant dense<0.000000e+00> : vector<128xf32>
      %66 = vector.multi_reduction <add>, %65, %cst_36 [1] : vector<128x128xf32> to vector<128xf32>
      %67 = vector.shape_cast %66 : vector<128xf32> to vector<128x1xf32>
      %c0_37 = arith.constant 0 : index
      %c0_38 = arith.constant 0 : index
      %c0_39 = arith.constant 0 : index
      %c0_40 = arith.constant 0 : index
      %68 = vector.load %arg9[%c0_37, %c0_38, %c0_39, %c0_40] : memref<1x1x128x1xf32, #tpu.memory_space<vmem>>, vector<1x1x128x1xf32>
      %69 = vector.shape_cast %68 : vector<1x1x128x1xf32> to vector<128x1xf32>
      %70 = vector.shape_cast %67 : vector<128x1xf32> to vector<1x1x128x1xf32>
      tpu.vector_store %arg9[%c0_37, %c0_38, %c0_39, %c0_40], %70 {strides = array<i32>} : memref<1x1x128x1xf32, #tpu.memory_space<vmem>>, vector<1x1x128x1xf32>,
      %71 = arith.mulf %61, %47 : vector<128x128xf32>
      %cst_41 = arith.constant dense<0.000000e+00> : vector<128xf32>
      %72 = vector.multi_reduction <add>, %71, %cst_41 [1] : vector<128x128xf32> to vector<128xf32>
      %73 = vector.shape_cast %72 : vector<128xf32> to vector<128x1xf32>
      %c0_42 = arith.constant 0 : index
      %c0_43 = arith.constant 0 : index
      %c0_44 = arith.constant 0 : index
      %c0_45 = arith.constant 0 : index
      %74 = vector.load %arg10[%c0_42, %c0_43, %c0_44, %c0_45] : memref<1x1x128x1xf32, #tpu.memory_space<vmem>>, vector<1x1x128x1xf32>
      %75 = vector.shape_cast %74 : vector<1x1x128x1xf32> to vector<128x1xf32>
      %76 = vector.shape_cast %73 : vector<128x1xf32> to vector<1x1x128x1xf32>
      tpu.vector_store %arg10[%c0_42, %c0_43, %c0_44, %c0_45], %76 {strides = array<i32>} : memref<1x1x128x1xf32, #tpu.memory_space<vmem>>, vector<1x1x128x1xf32>,
      %77 = arith.mulf %61, %49 : vector<128x128xf32>
      %cst_46 = arith.constant dense<0.000000e+00> : vector<128xf32>
      %78 = vector.multi_reduction <add>, %77, %cst_46 [1] : vector<128x128xf32> to vector<128xf32>
      %79 = vector.shape_cast %78 : vector<128xf32> to vector<128x1xf32>
      %c0_47 = arith.constant 0 : index
      %c0_48 = arith.constant 0 : index
      %c0_49 = arith.constant 0 : index
      %c0_50 = arith.constant 0 : index
      %80 = vector.load %arg11[%c0_47, %c0_48, %c0_49, %c0_50] : memref<1x1x128x1xf32, #tpu.memory_space<vmem>>, vector<1x1x128x1xf32>
      %81 = vector.shape_cast %80 : vector<1x1x128x1xf32> to vector<128x1xf32>
      %82 = vector.shape_cast %79 : vector<128x1xf32> to vector<1x1x128x1xf32>
      tpu.vector_store %arg11[%c0_47, %c0_48, %c0_49, %c0_50], %82 {strides = array<i32>} : memref<1x1x128x1xf32, #tpu.memory_space<vmem>>, vector<1x1x128x1xf32>,
    } else {
    }
    return
  }
  func.func @transform_0(%arg0: i32, %arg1: i32, %arg2: i32) -> (i32, i32, i32) {
    %c3_i32 = arith.constant 3 : i32
    %0 = arith.muli %arg0, %c3_i32 : i32
    %1 = arith.addi %0, %arg2 : i32
    %c2_i32 = arith.constant 2 : i32
    %2 = arith.minsi %1, %c2_i32 : i32
    %c0_i32 = arith.constant 0 : i32
    %c0_i32_0 = arith.constant 0 : i32
    return %arg1, %c0_i32, %2 : i32, i32, i32
  }
  func.func @transform_1(%arg0: i32, %arg1: i32, %arg2: i32) -> (i32, i32) {
    %c0_i32 = arith.constant 0 : i32
    %c0_i32_0 = arith.constant 0 : i32
    %c0_i32_1 = arith.constant 0 : i32
    return %c0_i32, %c0_i32_0 : i32, i32
  }
  func.func @transform_2(%arg0: i32, %arg1: i32, %arg2: i32) -> (i32, i32, i32) {
    %c0_i32 = arith.constant 0 : i32
    %c0_i32_0 = arith.constant 0 : i32
    %c0_i32_1 = arith.constant 0 : i32
    return %arg1, %c0_i32, %c0_i32_0 : i32, i32, i32
  }
  func.func @transform_3(%arg0: i32, %arg1: i32, %arg2: i32) -> (i32, i32) {
    %c0_i32 = arith.constant 0 : i32
    %c0_i32_0 = arith.constant 0 : i32
    %c0_i32_1 = arith.constant 0 : i32
    return %c0_i32, %c0_i32_0 : i32, i32
  }
  func.func @transform_4(%arg0: i32, %arg1: i32, %arg2: i32) -> (i32, i32) {
    %c0_i32 = arith.constant 0 : i32
    %c0_i32_0 = arith.constant 0 : i32
    %c0_i32_1 = arith.constant 0 : i32
    return %c0_i32, %c0_i32_0 : i32, i32
  }
  func.func @transform_5(%arg0: i32, %arg1: i32, %arg2: i32) -> (i32, i32, i32, i32) {
    %c0_i32 = arith.constant 0 : i32
    %c0_i32_0 = arith.constant 0 : i32
    %c0_i32_1 = arith.constant 0 : i32
    return %arg0, %arg1, %c0_i32, %c0_i32_0 : i32, i32, i32, i32
  }
  func.func @transform_6(%arg0: i32, %arg1: i32, %arg2: i32) -> (i32, i32, i32, i32) {
    %c0_i32 = arith.constant 0 : i32
    %c0_i32_0 = arith.constant 0 : i32
    %c0_i32_1 = arith.constant 0 : i32
    return %arg0, %arg1, %c0_i32, %c0_i32_0 : i32, i32, i32, i32
  }
  func.func @transform_7(%arg0: i32, %arg1: i32, %arg2: i32) -> (i32, i32, i32, i32) {
    %c0_i32 = arith.constant 0 : i32
    %c0_i32_0 = arith.constant 0 : i32
    %c0_i32_1 = arith.constant 0 : i32
    return %arg0, %arg1, %c0_i32, %c0_i32_0 : i32, i32, i32, i32
  }
  func.func @transform_8(%arg0: i32, %arg1: i32, %arg2: i32) -> (i32, i32, i32, i32) {
    %c0_i32 = arith.constant 0 : i32
    %c0_i32_0 = arith.constant 0 : i32
    %c0_i32_1 = arith.constant 0 : i32
    return %arg0, %arg1, %c0_i32, %c0_i32_0 : i32, i32, i32, i32
  }
}

</mosaic_0001>

<bundles_post_ra>
// kernel: tpu_custom_call.1
= control target key start
LH: loop header
LB: loop body
LE: loop exit
PB: predicated region body
PF: predicated region fallthrough
CT: control target
= control target key end

     0   :  { %s3506_s0 = inlined_call_operand.vmem [shape: f32[2,128,300], index: 0, kind: input, shape index: {}]   ;;  %s3507_s1 = inlined_call_operand.vmem [shape: f32[32,128], index: 1, kind: input, shape index: {}]   ;;  %s3508_s2 = inlined_call_operand.vmem [shape: f32[2,32,1], index: 2, kind: input, shape index: {}]   ;;  %s3509_s3 = inlined_call_operand.vmem [shape: f32[128,32], index: 3, kind: input, shape index: {}]   ;;  %s3510_s4 = inlined_call_operand.vmem [shape: f32[128,1], index: 4, kind: input, shape index: {}]   ;;  %s3511_s5 = inlined_call_operand.vmem [shape: f32[1,2,128,1], index: 5, kind: output, shape index: {0}]   ;;  %s3512_s6 = inlined_call_operand.vmem [shape: f32[1,2,128,1], index: 6, kind: output, shape index: {1}]   ;;  %s3513_s7 = inlined_call_operand.vmem [shape: f32[1,2,128,1], index: 7, kind: output, shape index: {2}]   ;;  %s3514_s8 = inlined_call_operand.vmem [shape: f32[1,2,128,1], index: 8, kind: output, shape index: {3}]  }
   0x1   :  { %3536 = sst [smem:[#allocation28_spill]] %s3506_s0 }
   0x2   :  { %s2464_s27 = smov 0   ;;  %s2466_s28 = smov 0  }
   0x3   :  { %s2468_s29 = smov 0   ;;  %s2470_s30 = smov 0  }
   0x4   :  { %s2472_s9 = smov 0   ;;  %s2474_s10 = smov 0  }
   0x5   :  { %s2476_s11 = smov 0  }
   0x6 LB: > { %s31_s12 = sadd.s32 1, %s2405_s9  ;;  %s34_s13 = sadd.s32 1, %s2409_s10  ;;  %s2413_s11 = sphi %s2476_s11, %s19_s11   ;;  %s2409_s10 = sphi %s2474_s10, %s3587_s10   ;;  %s2405_s9 = sphi %s2472_s9, %s3586_s9   ;;  %s2401_s30 = sphi %s2470_s30, %s3585_s30   ;;  %s2397_s29 = sphi %s2468_s29, %s3584_s29   ;;  %s2393_s28 = sphi %s2466_s28, %s3583_s28   ;;  %s2389_s27 = sphi %s2464_s27, %s3582_s27  }
   0x7   : > { %p32_p0 = scmp.ge.s32.totalorder %s31_s12, 3  ;;  %p44_p1 = scmp.lt.s32.totalorder %s2405_s9, 2 }
   0x8   : > { %p62_p2 = scmp.ne.s32.totalorder %s2393_s28, %s2389_s27  ;;  %p63_p5 = scmp.eq.s32.totalorder %s2413_s11, 0 }
   0x9   : > { %s3589_s12 = smov (%p32_p0, %s31_s12), 0  ;;  %s3591_s13 = smov (!%p32_p0, %s34_s13), %s2409_s10 }
   0xa   : > { %3537 = sst [smem:[#allocation7_spill]] %s3589_s12  ;;  %p36_p3 = scmp.ge.s32.totalorder %s3591_s13, 2 }
   0xb   : > { %s45_s14 = scalar_select %p44_p1, %s2405_s9, 2 }
   0xc   : > { %p48_p4 = scmp.lt.s32.totalorder %s3589_s12, 2  ;;  %s3593_s13 = smov (%p36_p3, %s3591_s13), 0 }
   0xd   : > { %3538 = sst [smem:[#allocation8_spill]] %s3593_s13  ;;  %s50_s16 = ssub.s32 %s2409_s10, %s3593_s13 }
   0xe   : > { %s49_s15 = scalar_select %p48_p4, %s3589_s12, 2 }
   0xf   : > { %p64_p6 = por %p63_p5, %p62_p2  ;;  %s55_s19 = sadd.s32 1, %s2393_s28 }
  0x10   : > { %s51_s17 = ssub.s32 %s45_s14, %s49_s15  ;;  %p2019_p8 = scmp.ge.s32.totalorder %s2413_s11, 6 }
  0x11   : > { %s52_s18 = sor.u32 %s51_s17, %s50_s16 }
  0x12   : > { %p53_p7 = scmp.eq.s32.totalorder %s52_s18, 0  ;;  %298 = sbr.rel (%p2019_p8) target bundleno = 41 (0x29), region = 28 }
  0x14   : > { %s2517_s20 = scalar_select %p53_p7, %s2393_s28, %s55_s19  }
  0x17   : > { %301 = sbr.rel (!%p64_p6) target bundleno = 41 (0x29), region = 32  ;;  %s303_s21 = sand.u32 (%p64_p6), 1, %s2393_s28  }
  0x18   : > { %s2187_s22 = smul.u32 (%p64_p6), 48, %s2409_s10  ;;  %s2020_s23 = sshll.u32 (%p64_p6), %s303_s21, 7 }
  0x19   : > { %s3539_s0 = sld [smem:[#allocation28_spill]] (%p64_p6)  ;;  %s305_s16 = scalar_lea.vmem (%p64_p6), [#allocation6], %s2020_s23 }
  0x1a   : > { %s311_s24 = sadd.s32 (%p64_p6), %s2187_s22, %s45_s14 }
  0x1b   : > { %s2021_s25 = sshll.u32 (%p64_p6), %s311_s24, 3 }
  0x1f   : > { %s2525_s15 = scalar_lea.vmem %s3539_s0, %s2021_s25 }
  0x20   : > { %v372_v0 = vld [vmem:[%s2525_s15] sm:$0xff]  ;;  %v374_v1 = vld [vmem:[%s2525_s15 + $0x18] sm:$0xff]  ;;  %v376_v2 = vld [vmem:[%s2525_s15 + $0x30] sm:$0xff] }
  0x21   : > { %373 = vst [vmem:[%s305_s16] sm:$0xff] %v372_v0  ;;  %375 = vst [vmem:[%s305_s16 + $0x8] sm:$0xff] %v374_v1  ;;  %v378_v3 = vld [vmem:[%s2525_s15 + $0x48] sm:$0xff]  ;;  %v380_v4 = vld [vmem:[%s2525_s15 + $0x60] sm:$0xff] }
  0x22   : > { %377 = vst [vmem:[%s305_s16 + $0x10] sm:$0xff] %v376_v2  ;;  %v382_v5 = vld [vmem:[%s2525_s15 + $0x78] sm:$0xff]  ;;  %379 = vst [vmem:[%s305_s16 + $0x18] sm:$0xff] %v378_v3  ;;  %v384_v6 = vld [vmem:[%s2525_s15 + $0x90] sm:$0xff] }
  0x23   : > { %381 = vst [vmem:[%s305_s16 + $0x20] sm:$0xff] %v380_v4  ;;  %383 = vst [vmem:[%s305_s16 + $0x28] sm:$0xff] %v382_v5  ;;  %v386_v7 = vld [vmem:[%s2525_s15 + $0xa8] sm:$0xff]  ;;  %v388_v8 = vld [vmem:[%s2525_s15 + $0xc0] sm:$0xff] }
  0x24   : > { %385 = vst [vmem:[%s305_s16 + $0x30] sm:$0xff] %v384_v6  ;;  %387 = vst [vmem:[%s305_s16 + $0x38] sm:$0xff] %v386_v7  ;;  %v390_v9 = vld [vmem:[%s2525_s15 + $0xd8] sm:$0xff]  ;;  %v392_v10 = vld [vmem:[%s2525_s15 + $0xf0] sm:$0xff] }
  0x25   : > { %389 = vst [vmem:[%s305_s16 + $0x40] sm:$0xff] %v388_v8  ;;  %v394_v11 = vld [vmem:[%s2525_s15 + $0x108] sm:$0xff]  ;;  %391 = vst [vmem:[%s305_s16 + $0x48] sm:$0xff] %v390_v9  ;;  %v396_v12 = vld [vmem:[%s2525_s15 + $0x120] sm:$0xff] }
  0x26   : > { %393 = vst [vmem:[%s305_s16 + $0x50] sm:$0xff] %v392_v10  ;;  %395 = vst [vmem:[%s305_s16 + $0x58] sm:$0xff] %v394_v11  ;;  %v398_v13 = vld [vmem:[%s2525_s15 + $0x138] sm:$0xff]  ;;  %v400_v14 = vld [vmem:[%s2525_s15 + $0x150] sm:$0xff] }
  0x27   : > { %397 = vst [vmem:[%s305_s16 + $0x60] sm:$0xff] %v396_v12  ;;  %399 = vst [vmem:[%s305_s16 + $0x68] sm:$0xff] %v398_v13  ;;  %v402_v15 = vld [vmem:[%s2525_s15 + $0x168] sm:$0xff] }
  0x28   : > { %401 = vst [vmem:[%s305_s16 + $0x70] sm:$0xff] %v400_v14  ;;  %403 = vst [vmem:[%s305_s16 + $0x78] sm:$0xff] %v402_v15 }
  0x29 PF: > { %p2022_p9 = scmp.ge.s32.totalorder %s2413_s11, 1  ;;  %p416_p10 = scmp.lt.s32.totalorder %s2413_s11, 7 }
  0x2b   : > { %p417_p11 = pnand %p2022_p9, %p416_p10 }
  0x2d   : > { %420 = sbr.rel (%p417_p11) target bundleno = 1028 (0x404), region = 74 }
  0x32   : > { %s423_s13 = sand.u32 1, %s2389_s27   ;;  %p496_p12 = scmp.lt.s32.totalorder %s2401_s30, 1 }
  0x33   : > { %s2023_s14 = sshll.u32 %s423_s13, 7  ;;  %p2034_p13 = scmp.ne.s32.totalorder %s2397_s29, 0 }
  0x34   : > { %s3595_s30 = smov (!%p496_p12, %s2401_s30), 1  ;;  %s2573_s19 = scalar_lea.vmem [#allocation6], %s2023_s14 }
  0x35   : > { %s2072_s17 = sshll.u32 %s3595_s30, 5  ;;  %s2073_s18 = sshll.u32 %s3595_s30, 7 }
  0x36   : > { %s2551_s22 = scalar_lea.vmem %s3508_s2, %s2072_s17  ;;  %s2556_s25 = scalar_lea.vmem %s3511_s5, %s2073_s18 }
  0x37   : > { %s2561_s16 = scalar_lea.vmem %s3512_s6, %s2073_s18  ;;  %s2566_s0 = scalar_lea.vmem %s3513_s7, %s2073_s18 }
  0x38   : > { %s2571_s17 = scalar_lea.vmem %s3514_s8, %s2073_s18  ;;  %540 = sbr.rel (%p2034_p13) target bundleno = 94 (0x5e), region = 82 }
  0x3d   : > { %v2415_v16 = vmov -1e+30   ;;  %v2416_v17 = vmov 0.0  }
  0x3e   : > { %541 = vst [vmem:[#allocation2 + $0x30] sm:$0xff] %v2415_v16  ;;  %542 = vst [vmem:[#allocation2] sm:$0xff] %v2415_v16 }
  0x3f   : > { %543 = vst [vmem:[#allocation2 + $0x58] sm:$0xff] %v2415_v16  ;;  %544 = vst [vmem:[#allocation2 + $0x18] sm:$0xff] %v2415_v16 }
  0x40   : > { %545 = vst [vmem:[#allocation2 + $0x50] sm:$0xff] %v2415_v16  ;;  %546 = vst [vmem:[#allocation2 + $0x68] sm:$0xff] %v2415_v16 }
  0x41   : > { %547 = vst [vmem:[#allocation2 + $0x8] sm:$0xff] %v2415_v16  ;;  %548 = vst [vmem:[#allocation2 + $0x48] sm:$0xff] %v2415_v16 }
  0x42   : > { %549 = vst [vmem:[#allocation2 + $0x40] sm:$0xff] %v2415_v16  ;;  %550 = vst [vmem:[#allocation2 + $0x20] sm:$0xff] %v2415_v16 }
  0x43   : > { %551 = vst [vmem:[#allocation2 + $0x10] sm:$0xff] %v2415_v16  ;;  %552 = vst [vmem:[#allocation2 + $0x38] sm:$0xff] %v2415_v16 }
  0x44   : > { %553 = vst [vmem:[#allocation2 + $0x60] sm:$0xff] %v2415_v16  ;;  %554 = vst [vmem:[#allocation2 + $0x70] sm:$0xff] %v2415_v16 }
  0x45   : > { %555 = vst [vmem:[#allocation2 + $0x78] sm:$0xff] %v2415_v16  ;;  %556 = vst [vmem:[#allocation2 + $0x28] sm:$0xff] %v2415_v16 }
  0x46   : > { %557 = vst [vmem:[#allocation3 + $0x28] sm:$0xff] %v2416_v17  ;;  %558 = vst [vmem:[#allocation3 + $0x68] sm:$0xff] %v2416_v17 }
  0x47   : > { %559 = vst [vmem:[#allocation3 + $0x10] sm:$0xff] %v2416_v17  ;;  %560 = vst [vmem:[#allocation3 + $0x40] sm:$0xff] %v2416_v17 }
  0x48   : > { %561 = vst [vmem:[#allocation3 + $0x48] sm:$0xff] %v2416_v17  ;;  %562 = vst [vmem:[#allocation3 + $0x30] sm:$0xff] %v2416_v17 }
  0x49   : > { %563 = vst [vmem:[#allocation3 + $0x70] sm:$0xff] %v2416_v17  ;;  %564 = vst [vmem:[#allocation3 + $0x38] sm:$0xff] %v2416_v17 }
  0x4a   : > { %565 = vst [vmem:[#allocation3 + $0x20] sm:$0xff] %v2416_v17  ;;  %566 = vst [vmem:[#allocation3 + $0x78] sm:$0xff] %v2416_v17 }
  0x4b   : > { %567 = vst [vmem:[#allocation3 + $0x18] sm:$0xff] %v2416_v17  ;;  %568 = vst [vmem:[#allocation3 + $0x58] sm:$0xff] %v2416_v17 }
  0x4c   : > { %569 = vst [vmem:[#allocation3] sm:$0xff] %v2416_v17  ;;  %570 = vst [vmem:[#allocation3 + $0x8] sm:$0xff] %v2416_v17 }
  0x4d   : > { %571 = vst [vmem:[#allocation3 + $0x60] sm:$0xff] %v2416_v17  ;;  %572 = vst [vmem:[#allocation3 + $0x50] sm:$0xff] %v2416_v17 }
  0x4e   : > { %573 = vst [vmem:[#allocation4 + $0x8] sm:$0xff] %v2416_v17  ;;  %574 = vst [vmem:[#allocation4] sm:$0xff] %v2416_v17 }
  0x4f   : > { %575 = vst [vmem:[#allocation4 + $0x48] sm:$0xff] %v2416_v17  ;;  %576 = vst [vmem:[#allocation4 + $0x60] sm:$0xff] %v2416_v17 }
  0x50   : > { %577 = vst [vmem:[#allocation4 + $0x68] sm:$0xff] %v2416_v17  ;;  %578 = vst [vmem:[#allocation4 + $0x18] sm:$0xff] %v2416_v17 }
  0x51   : > { %579 = vst [vmem:[#allocation4 + $0x10] sm:$0xff] %v2416_v17  ;;  %580 = vst [vmem:[#allocation4 + $0x38] sm:$0xff] %v2416_v17 }
  0x52   : > { %581 = vst [vmem:[#allocation4 + $0x40] sm:$0xff] %v2416_v17  ;;  %582 = vst [vmem:[#allocation4 + $0x28] sm:$0xff] %v2416_v17 }
  0x53   : > { %583 = vst [vmem:[#allocation4 + $0x70] sm:$0xff] %v2416_v17  ;;  %584 = vst [vmem:[#allocation4 + $0x20] sm:$0xff] %v2416_v17 }
  0x54   : > { %585 = vst [vmem:[#allocation4 + $0x58] sm:$0xff] %v2416_v17  ;;  %586 = vst [vmem:[#allocation4 + $0x30] sm:$0xff] %v2416_v17 }
  0x55   : > { %587 = vst [vmem:[#allocation4 + $0x50] sm:$0xff] %v2416_v17  ;;  %588 = vst [vmem:[#allocation4 + $0x78] sm:$0xff] %v2416_v17 }
  0x56   : > { %589 = vst [vmem:[#allocation5 + $0x18] sm:$0xff] %v2416_v17  ;;  %590 = vst [vmem:[#allocation5 + $0x38] sm:$0xff] %v2416_v17 }
  0x57   : > { %591 = vst [vmem:[#allocation5 + $0x48] sm:$0xff] %v2416_v17  ;;  %592 = vst [vmem:[#allocation5 + $0x40] sm:$0xff] %v2416_v17 }
  0x58   : > { %593 = vst [vmem:[#allocation5 + $0x28] sm:$0xff] %v2416_v17  ;;  %594 = vst [vmem:[#allocation5] sm:$0xff] %v2416_v17 }
  0x59   : > { %595 = vst [vmem:[#allocation5 + $0x8] sm:$0xff] %v2416_v17  ;;  %596 = vst [vmem:[#allocation5 + $0x70] sm:$0xff] %v2416_v17 }
  0x5a   : > { %597 = vst [vmem:[#allocation5 + $0x68] sm:$0xff] %v2416_v17  ;;  %598 = vst [vmem:[#allocation5 + $0x60] sm:$0xff] %v2416_v17 }
  0x5b   : > { %599 = vst [vmem:[#allocation5 + $0x78] sm:$0xff] %v2416_v17  ;;  %600 = vst [vmem:[#allocation5 + $0x30] sm:$0xff] %v2416_v17 }
  0x5c   : > { %601 = vst [vmem:[#allocation5 + $0x50] sm:$0xff] %v2416_v17  ;;  %602 = vst [vmem:[#allocation5 + $0x20] sm:$0xff] %v2416_v17 }
  0x5d   : > { %603 = vst [vmem:[#allocation5 + $0x58] sm:$0xff] %v2416_v17  ;;  %604 = vst [vmem:[#allocation5 + $0x10] sm:$0xff] %v2416_v17 }
  0x5e PF: > { %s2035_s12 = sshll.u32 %s2397_s29, 7  ;;  %v624_v18 = vlaneseq  ;;  %v2417_v20 = vmov 0   ;;  %v620_v22 = vld [vmem:[%s2573_s19 + $0x78] sm:$0xff]  ;;  %v648_v24 = vld [vmem:[%s3507_s1] sm:$0xff]  ;;  %v619_v25 = vld [vmem:[%s2573_s19 + $0x70] sm:$0xff]  ;;  %vm877_vm1 = vcmask 261120  }
  0x5f   : > { %v626_v19 = vstv %s2035_s12  ;;  %2248 = vset.pattern.permute.xlu0 %v2417_v20  ;;  %2249 = vset.pattern.permute.xlu1 %v2417_v20  ;;  %v655_v26 = vld [vmem:[%s2551_s22 + $0x18] sm:$0xff]  ;;  %v653_v27 = vld [vmem:[%s2551_s22 + $0x8] sm:$0xff]  ;;  %v654_v29 = vld [vmem:[%s2551_s22 + $0x10] sm:$0xff]  ;;  %p2069_p0 = scmp.ne.s32.totalorder %s2397_s29, 2 }
  0x60   : > { %v625_v21 = vand.u32 127, %v624_v18  ;;  %2149 = vmatprep.mubr.f32.mxu0 %v648_v24  ;;  %673 = vperm.xlu0 %2248, %v655_v26   ;;  %v618_v28 = vld [vmem:[%s2573_s19 + $0x68] sm:$0xff]  ;;  %v652_v30 = vld [vmem:[%s2551_s22] sm:$0xff]  ;;  %v2604_v32 = vld [vmem:[%s2573_s19 + $0x58] sm:$0xff] }
  0x61   : > { %663 = vperm.xlu1 %2249, %v653_v27   ;;  %v617_v31 = vld [vmem:[%s2573_s19 + $0x60] sm:$0xff]  ;;  %v782_v34 = vld [vmem:[%s3510_s4 + $0x8] sm:$0xff]  ;;  %v615_v35 = vld [vmem:[%s2573_s19 + $0x50] sm:$0xff] }
  0x62   : > { %v2578_v23 = vadd.s32 %v626_v19, %v625_v21  ;;  %v781_v33 = vld [vmem:[%s3510_s4] sm:$0xff]  ;;  %v2624_v36 = vld [vmem:[%s2573_s19 + $0x48] sm:$0xff]  ;;  %v783_v37 = vld [vmem:[%s3510_s4 + $0x10] sm:$0xff] }
  0x63   : > { %v784_v38 = vld [vmem:[%s3510_s4 + $0x18] sm:$0xff]  ;;  %v2637_v39 = vld [vmem:[%s2573_s19 + $0x40] sm:$0xff]  ;;  %v786_v42 = vld [vmem:[%s3510_s4 + $0x28] sm:$0xff] }
  0x64   : > { %vm628_vm0 = vcmp.lt.s32.totalorder %v2578_v23, 300  ;;  %668 = vperm.xlu0 %2248, %v654_v29   ;;  %v2646_v40 = vld [vmem:[%s2573_s19 + $0x38] sm:$0xff]  ;;  %v785_v41 = vld [vmem:[%s3510_s4 + $0x20] sm:$0xff]  ;;  %v2661_v43 = vld [vmem:[%s2573_s19 + $0x30] sm:$0xff] }
  0x65   : > { %2117 = vmatprep.subr.msk.mxu0 %vm628_vm0, %v620_v22  ;;  %658 = vperm.xlu1 %2249, %v652_v30   ;;  %v2670_v44 = vld [vmem:[%s2573_s19 + $0x28] sm:$0xff]  ;;  %v787_v45 = vld [vmem:[%s3510_s4 + $0x30] sm:$0xff]  ;;  %v788_v46 = vld [vmem:[%s3510_s4 + $0x38] sm:$0xff] }
  0x66   : > { %2118 = vmatpush3.msk.msra.mxu0 %vm628_vm0, %v620_v22  ;;  %v2685_v47 = vld [vmem:[%s2573_s19 + $0x20] sm:$0xff]  ;;  %v2694_v48 = vld [vmem:[%s2573_s19 + $0x18] sm:$0xff]  ;;  %v790_v50 = vld [vmem:[%s3510_s4 + $0x48] sm:$0xff] }
  0x67   : > { %2119 = vmatprep.subr.msk.mxu0 %vm628_vm0, %v619_v25  ;;  %v789_v49 = vld [vmem:[%s3510_s4 + $0x40] sm:$0xff]  ;;  %v2709_v51 = vld [vmem:[%s2573_s19 + $0x10] sm:$0xff]  ;;  %v2718_v52 = vld [vmem:[%s2573_s19 + $0x8] sm:$0xff] }
  0x68   : > { %2120 = vmatpush3.msk.msra.mxu0 %vm628_vm0, %v619_v25  ;;  %799 = vperm.xlu0 %2248, %v781_v33   ;;  %v791_v53 = vld [vmem:[%s3510_s4 + $0x50] sm:$0xff]  ;;  %v792_v54 = vld [vmem:[%s3510_s4 + $0x58] sm:$0xff]  ;;  %v2733_v55 = vld [vmem:[%s2573_s19] sm:$0xff] }
  0x69   : > { %2121 = vmatprep.subr.msk.mxu0 %vm628_vm0, %v618_v28  ;;  %804 = vperm.xlu1 %2249, %v782_v34   ;;  %v649_v56 = vld [vmem:[%s3507_s1 + $0x8] sm:$0xff]  ;;  %v793_v57 = vld [vmem:[%s3510_s4 + $0x60] sm:$0xff]  ;;  %v650_v58 = vld [vmem:[%s3507_s1 + $0x10] sm:$0xff] }
  0x6a   : > { %2122 = vmatpush3.msk.msra.mxu0 %vm628_vm0, %v618_v28  ;;  %v794_v59 = vld [vmem:[%s3510_s4 + $0x68] sm:$0xff]  ;;  %v651_v60 = vld [vmem:[%s3507_s1 + $0x18] sm:$0xff]  ;;  %v795_v61 = vld [vmem:[%s3510_s4 + $0x70] sm:$0xff] }
  0x6b   : > { %2123 = vmatprep.subr.msk.mxu0 %vm628_vm0, %v617_v31  ;;  %v796_v62 = vld [vmem:[%s3510_s4 + $0x78] sm:$0xff]  ;;  %v765_v63 = vld [vmem:[%s3509_s3] sm:$0xff]  ;;  %v766_v16 = vld [vmem:[%s3509_s3 + $0x8] sm:$0xff] }
  0x6c   : > { %2124 = vmatpush3.msk.msra.mxu0 %vm628_vm0, %v617_v31  ;;  %809 = vperm.xlu0 %2248, %v783_v37   ;;  %v767_v17 = vld [vmem:[%s3509_s3 + $0x10] sm:$0xff]  ;;  %v768_v18 = vld [vmem:[%s3509_s3 + $0x18] sm:$0xff]  ;;  %v769_v19 = vld [vmem:[%s3509_s3 + $0x20] sm:$0xff] }
  0x6d   : > { %2125 = vmatprep.subr.msk.mxu0 %vm628_vm0, %v2604_v32  ;;  %814 = vperm.xlu1 %2249, %v784_v38   ;;  %v770_v20 = vld [vmem:[%s3509_s3 + $0x28] sm:$0xff]  ;;  %v771_v21 = vld [vmem:[%s3509_s3 + $0x30] sm:$0xff]  ;;  %v772_v22 = vld [vmem:[%s3509_s3 + $0x38] sm:$0xff] }
  0x6e   : > { %2126 = vmatpush3.msk.msra.mxu0 %vm628_vm0, %v2604_v32  ;;  %2163 = vmatprep.mubr.msk.f32.mxu1 %vm877_vm1, %v765_v63  ;;  %v773_v24 = vld [vmem:[%s3509_s3 + $0x40] sm:$0xff]  ;;  %v774_v25 = vld [vmem:[%s3509_s3 + $0x48] sm:$0xff]  ;;  %v775_v26 = vld [vmem:[%s3509_s3 + $0x50] sm:$0xff]  ;;  %v2852_v63 = vsel %vm628_vm0, %v2670_v44, 0.0 }
  0x6f   : > { %2127 = vmatprep.subr.msk.mxu0 %vm628_vm0, %v615_v35  ;;  %v776_v27 = vld [vmem:[%s3509_s3 + $0x58] sm:$0xff]  ;;  %v777_v28 = vld [vmem:[%s3509_s3 + $0x60] sm:$0xff]  ;;  %v778_v29 = vld [vmem:[%s3509_s3 + $0x68] sm:$0xff] }
  0x70   : > { %2128 = vmatpush3.msk.msra.mxu0 %vm628_vm0, %v615_v35  ;;  %819 = vperm.xlu0 %2248, %v785_v41   ;;  %v779_v30 = vld [vmem:[%s3509_s3 + $0x70] sm:$0xff]  ;;  %v780_v31 = vld [vmem:[%s3509_s3 + $0x78] sm:$0xff]  ;;  %v1072_v38 = vld [vmem:[#allocation2] sm:$0xff] }
  0x71   : > { %2129 = vmatprep.subr.msk.mxu0 %vm628_vm0, %v2624_v36  ;;  %824 = vperm.xlu1 %2249, %v786_v42  }
  0x72   : > { %2130 = vmatpush3.msk.msra.mxu0 %vm628_vm0, %v2624_v36 }
  0x73   : > { %2131 = vmatprep.subr.msk.mxu0 %vm628_vm0, %v2637_v39 }
  0x74   : > { %2132 = vmatpush3.msk.msra.mxu0 %vm628_vm0, %v2637_v39  ;;  %829 = vperm.xlu0 %2248, %v787_v45  }
  0x75   : > { %2133 = vmatprep.subr.msk.mxu0 %vm628_vm0, %v2646_v40  ;;  %834 = vperm.xlu1 %2249, %v788_v46   ;;  %v1071_v46 = vld [vmem:[#allocation2 + $0x30] sm:$0xff] }
  0x76   : > { %2134 = vmatpush3.msk.msra.mxu0 %vm628_vm0, %v2646_v40 }
  0x77   : > { %2135 = vmatprep.subr.msk.mxu0 %vm628_vm0, %v2661_v43 }
  0x78   : > { %2136 = vmatpush3.msk.msra.mxu0 %vm628_vm0, %v2661_v43  ;;  %839 = vperm.xlu0 %2248, %v789_v49  }
  0x79   : > { %2137 = vmatprep.subr.msk.mxu0 %vm628_vm0, %v2670_v44  ;;  %844 = vperm.xlu1 %2249, %v790_v50  }
  0x7a   : > { %2138 = vmatpush3.msk.msra.mxu0 %vm628_vm0, %v2670_v44  ;;  %v2865_v44 = vsel %vm628_vm0, %v2694_v48, 0.0 }
  0x7b   : > { %2139 = vmatprep.subr.msk.mxu0 %vm628_vm0, %v2685_v47 }
  0x7c   : > { %2140 = vmatpush3.msk.msra.mxu0 %vm628_vm0, %v2685_v47  ;;  %849 = vperm.xlu0 %2248, %v791_v53  }
  0x7d   : > { %2141 = vmatprep.subr.msk.mxu0 %vm628_vm0, %v2694_v48  ;;  %854 = vperm.xlu1 %2249, %v792_v54  }
  0x7e   : > { %2142 = vmatpush3.msk.msra.mxu0 %vm628_vm0, %v2694_v48 }
  0x7f   : > { %2143 = vmatprep.subr.msk.mxu0 %vm628_vm0, %v2709_v51 }
  0x80   : > { %2144 = vmatpush3.msk.msra.mxu0 %vm628_vm0, %v2709_v51  ;;  %859 = vperm.xlu0 %2248, %v793_v57  }
  0x81   : > { %2145 = vmatprep.subr.msk.mxu0 %vm628_vm0, %v2718_v52  ;;  %864 = vperm.xlu1 %2249, %v794_v59  }
  0x82   : > { %2146 = vmatpush3.msk.msra.mxu0 %vm628_vm0, %v2718_v52 }
  0x83   : > { %2147 = vmatprep.subr.msk.mxu0 %vm628_vm0, %v2733_v55 }
  0x84   : > { %2148 = vmatpush3.msk.msra.mxu0 %vm628_vm0, %v2733_v55  ;;  %869 = vperm.xlu0 %2248, %v795_v61   ;;  %v2842_v61 = vsel %vm628_vm0, %v2646_v40, 0.0 }
  0x85   : > { %2150 = vmatmul.mubr.f32.vlgmr.msra.gmra.mxu0 %v649_v56  ;;  %874 = vperm.xlu1 %2249, %v796_v62   ;;  %v2847_v62 = vsel %vm628_vm0, %v2661_v43, 0.0  ;;  %v1073_v43 = vld [vmem:[#allocation2 + $0x58] sm:$0xff] }
  0x86   : > { %2152 = vmatprep.mubr.f32.mxu0 %v650_v58 }
  0x89   : > { %2153 = vmatmul.mubr.f32.gmra.mxu0 %v651_v60  ;;  %v1074_v60 = vld [vmem:[#allocation2 + $0x18] sm:$0xff] }
  0xdb   : > { %v674_v0 = vpop.permute.xlu0 %673 }
  0xdc   : > { %v664_v2 = vpop.permute.xlu1 %663 }
  0xdf   : > { %v669_v6 = vpop.permute.xlu0 %668 }
  0xe0   : > { %v659_v10 = vpop.permute.xlu1 %658 }
  0xe3   : > { %v800_v34 = vpop.permute.xlu0 %799 }
  0xe4   : > { %v805_v33 = vpop.permute.xlu1 %804 }
  0xe7   : > { %v810_v41 = vpop.permute.xlu0 %809 }
  0xe8   : > { %v815_v35 = vpop.permute.xlu1 %814 }
  0xec   : > { %v825_v53 = vpop.permute.xlu1 %824 }
 0x145   : > { %v2151_v1 = vpop.f32.mrf.mxu0 }
 0x146   : > { %v748_v8 = vadd.f32 %v2151_v1, %v664_v2  ;;  %v820_v2 = vpop.permute.xlu0 %819 }
 0x147   : > { %v742_v3 = vpop.f32.mrf.mxu0 }
 0x148   : > { %v743_v11 = vadd.f32 %v742_v3, %v659_v10 }
 0x149   : > { %v2154_v4 = vpop.f32.mrf.mxu0 }
 0x14a   : > { %v758_v5 = vadd.f32 %v2154_v4, %v674_v0  ;;  %v2857_v0 = vsel %vm628_vm0, %v2685_v47, 0.0  ;;  %v2870_v47 = vsel %vm628_vm0, %v2709_v51, 0.0 }
 0x14b   : > { %v752_v7 = vpop.f32.mrf.mxu0 }
 0x14c   : > { %2250 = vtanh.f32 %v758_v5  ;;  %v753_v9 = vadd.f32 %v752_v7, %v669_v6 }
 0x14e   : > { %2252 = vtanh.f32 %v753_v9  ;;  %v1076_v9 = vld [vmem:[#allocation2 + $0x68] sm:$0xff] }
 0x14f   : > { %2254 = vtanh.f32 %v748_v8 }
 0x150   : > { %2256 = vtanh.f32 %v743_v11 }
 0x159   : > { %v2251_v12 = vpop.eup %2250 }
 0x15a   : > { %2155 = vmatprep.subr.mxu1 %v2251_v12 }
 0x15b   : > { %v2253_v13 = vpop.eup %2252  ;;  %2156 = vmatpush3.msra.mxu1 %v2251_v12 }
 0x15c   : > { %2157 = vmatprep.subr.mxu1 %v2253_v13  ;;  %v2255_v14 = vpop.eup %2254 }
 0x15d   : > { %2158 = vmatpush3.msra.mxu1 %v2253_v13  ;;  %v2257_v15 = vpop.eup %2256  ;;  %v835_v13 = vpop.permute.xlu1 %834 }
 0x15e   : > { %2159 = vmatprep.subr.mxu1 %v2255_v14 }
 0x15f   : > { %2160 = vmatpush3.msra.mxu1 %v2255_v14 }
 0x160   : > { %2161 = vmatprep.subr.mxu1 %v2257_v15 }
 0x161   : > { %2162 = vmatpush3.msra.mxu1 %v2257_v15 }
 0x162   : > { %2164 = vmatmul.mubr.msk.f32.vlgmr.msra.gmra.mxu1 %vm877_vm1, %v766_v16  ;;  %v1075_v16 = vld [vmem:[#allocation2 + $0x50] sm:$0xff] }
 0x163   : > { %2166 = vmatprep.mubr.msk.f32.mxu1 %vm877_vm1, %v767_v17  ;;  %v2882_v17 = vsel %vm628_vm0, %v2718_v52, 0.0 }
 0x166   : > { %2167 = vmatmul.mubr.msk.f32.gmra.mxu1 %vm877_vm1, %v768_v18 }
 0x167   : > { %2169 = vmatprep.mubr.msk.f32.mxu1 %vm877_vm1, %v769_v19 }
 0x16a   : > { %2170 = vmatmul.mubr.msk.f32.gmra.mxu1 %vm877_vm1, %v770_v20 }
 0x16b   : > { %2172 = vmatprep.mubr.msk.f32.mxu1 %vm877_vm1, %v771_v21 }
 0x16e   : > { %2173 = vmatmul.mubr.msk.f32.gmra.mxu1 %vm877_vm1, %v772_v22 }
 0x16f   : > { %2175 = vmatprep.mubr.msk.f32.mxu1 %vm877_vm1, %v773_v24 }
 0x172   : > { %2176 = vmatmul.mubr.msk.f32.gmra.mxu1 %vm877_vm1, %v774_v25  ;;  %v830_v25 = vpop.permute.xlu0 %829 }
 0x173   : > { %2178 = vmatprep.mubr.msk.f32.mxu1 %vm877_vm1, %v775_v26 }
 0x176   : > { %2179 = vmatmul.mubr.msk.f32.gmra.mxu1 %vm877_vm1, %v776_v27 }
 0x177   : > { %2181 = vmatprep.mubr.msk.f32.mxu1 %vm877_vm1, %v777_v28 }
 0x17a   : > { %2182 = vmatmul.mubr.msk.f32.gmra.mxu1 %vm877_vm1, %v778_v29  ;;  %v1078_v29 = vld [vmem:[#allocation2 + $0x48] sm:$0xff] }
 0x17b   : > { %2184 = vmatprep.mubr.msk.f32.mxu1 %vm877_vm1, %v779_v30  ;;  %v2897_v30 = vsel %vm628_vm0, %v2733_v55, 0.0  ;;  %v1077_v55 = vld [vmem:[#allocation2 + $0x8] sm:$0xff] }
 0x17e   : > { %2185 = vmatmul.mubr.msk.f32.gmra.mxu1 %vm877_vm1, %v780_v31 }
 0x222   : > { %v2165_v37 = vpop.f32.mrf.mxu1 }
 0x223   : > { %v998_v42 = vadd.f32 %v2165_v37, %v805_v33 }
 0x224   : > { %v992_v45 = vpop.f32.mrf.mxu1 }
 0x225   : > { %v2832_v49 = vmax.f32 %v1072_v38, %v998_v42  ;;  %v993_v50 = vadd.f32 %v992_v45, %v800_v34 }
 0x226   : > { %v2168_v54 = vpop.f32.mrf.mxu1 }
 0x227   : > { %v1104_v56 = vsub.f32 %v1072_v38, %v2832_v49  ;;  %v1248_v57 = vsub.f32 %v998_v42, %v2832_v49  ;;  %1392 = vst [vmem:[#allocation2] sm:$0xff] %v2832_v49  ;;  %v2837_v58 = vmax.f32 %v1071_v46, %v993_v50  ;;  %v1008_v59 = vadd.f32 %v2168_v54, %v815_v35 }
 0x228   : > { %v1002_v1 = vpop.f32.mrf.mxu1 }
 0x229   : > { %v1121_v3 = vmul.f32 1.442695, %v1104_v56  ;;  %v1265_v40 = vmul.f32 1.442695, %v1248_v57  ;;  %v1103_v4 = vsub.f32 %v1071_v46, %v2837_v58  ;;  %v1247_v5 = vsub.f32 %v993_v50, %v2837_v58  ;;  %1391 = vst [vmem:[#allocation2 + $0x30] sm:$0xff] %v2837_v58 }
 0x22a   : > { %v2872_v6 = vmax.f32 %v1074_v60, %v1008_v59  ;;  %v1003_v7 = vadd.f32 %v1002_v1, %v810_v41  ;;  %v2171_v8 = vpop.f32.mrf.mxu1  ;;  %v845_v41 = vpop.permute.xlu1 %844 }
 0x22b   : > { %2258 = vpow2.f32 %v1121_v3  ;;  %v1119_v10 = vmul.f32 1.442695, %v1103_v4  ;;  %v1263_v11 = vmul.f32 1.442695, %v1247_v5  ;;  %v1018_v12 = vadd.f32 %v2171_v8, %v825_v53  ;;  %v1080_v53 = vld [vmem:[#allocation2 + $0x20] sm:$0xff]  ;;  %v1152_v8 = vld [vmem:[#allocation3 + $0x68] sm:$0xff] }
 0x22c   : > { %2260 = vpow2.f32 %v1265_v40  ;;  %v1106_v14 = vsub.f32 %v1074_v60, %v2872_v6  ;;  %v1250_v48 = vsub.f32 %v1008_v59, %v2872_v6  ;;  %1394 = vst [vmem:[#allocation2 + $0x18] sm:$0xff] %v2872_v6  ;;  %v2877_v15 = vmax.f32 %v1073_v43, %v1003_v7  ;;  %v1012_v51 = vpop.f32.mrf.mxu1  ;;  %v2911_v5 = vld [vmem:[#allocation2 + $0x40] sm:$0xff] }
 0x22d   : > { %2262 = vpow2.f32 %v1119_v10  ;;  %v2884_v18 = vmax.f32 %v1076_v9, %v1018_v12  ;;  %v1013_v19 = vadd.f32 %v1012_v51, %v820_v2  ;;  %v840_v2 = vpop.permute.xlu0 %839  ;;  %v1216_v10 = vld [vmem:[#allocation5 + $0x38] sm:$0xff] }
 0x22e   : > { %2264 = vpow2.f32 %v1263_v11  ;;  %v1125_v20 = vmul.f32 1.442695, %v1106_v14  ;;  %v1269_v21 = vmul.f32 1.442695, %v1250_v48  ;;  %v1105_v22 = vsub.f32 %v1073_v43, %v2877_v15  ;;  %1393 = vst [vmem:[#allocation2 + $0x58] sm:$0xff] %v2877_v15  ;;  %v2174_v24 = vpop.f32.mrf.mxu1 }
 0x22f   : > { %v1249_v26 = vsub.f32 %v1003_v7, %v2877_v15  ;;  %v1108_v27 = vsub.f32 %v1076_v9, %v2884_v18  ;;  %v1252_v52 = vsub.f32 %v1018_v12, %v2884_v18  ;;  %1396 = vst [vmem:[#allocation2 + $0x68] sm:$0xff] %v2884_v18  ;;  %v2892_v28 = vmax.f32 %v1075_v16, %v1013_v19  ;;  %v1184_v9 = vld [vmem:[#allocation4] sm:$0xff] }
 0x230   : > { %2266 = vpow2.f32 %v1125_v20  ;;  %v1123_v31 = vmul.f32 1.442695, %v1105_v22  ;;  %v1028_v33 = vadd.f32 %v2174_v24, %v835_v13  ;;  %v1022_v34 = vpop.f32.mrf.mxu1  ;;  %v2418_v43 = vmov 0.0   ;;  %v1215_v20 = vld [vmem:[#allocation5 + $0x18] sm:$0xff] }
 0x231   : > { %2268 = vpow2.f32 %v1269_v21  ;;  %v1267_v35 = vmul.f32 1.442695, %v1249_v26  ;;  %v1129_v37 = vmul.f32 1.442695, %v1108_v27  ;;  %v1273_v38 = vmul.f32 1.442695, %v1252_v52 }
 0x232   : > { %1395 = vst [vmem:[#allocation2 + $0x50] sm:$0xff] %v2892_v28  ;;  %2270 = vpow2.f32 %v1123_v31  ;;  %v1107_v42 = vsub.f32 %v1075_v16, %v2892_v28  ;;  %v1251_v45 = vsub.f32 %v1013_v19, %v2892_v28  ;;  %v2902_v46 = vmax.f32 %v1078_v29, %v1028_v33  ;;  %v2177_v50 = vpop.f32.mrf.mxu1  ;;  %v1151_v16 = vld [vmem:[#allocation3 + $0x28] sm:$0xff] }
 0x233   : > { %2272 = vpow2.f32 %v1267_v35  ;;  %v1023_v54 = vadd.f32 %v1022_v34, %v830_v25  ;;  %v1038_v56 = vadd.f32 %v2177_v50, %v845_v41  ;;  %v2915_v7 = vsel %vm628_vm0, 1.0, %v2418_v43  ;;  %v1183_v19 = vld [vmem:[#allocation4 + $0x8] sm:$0xff]  ;;  %v855_v50 = vpop.permute.xlu1 %854  ;;  %v1222_v43 = vld [vmem:[#allocation5 + $0x70] sm:$0xff] }
 0x234   : > { %2274 = vpow2.f32 %v1129_v37  ;;  %v1127_v57 = vmul.f32 1.442695, %v1107_v42  ;;  %v1271_v59 = vmul.f32 1.442695, %v1251_v45  ;;  %v1110_v60 = vsub.f32 %v1078_v29, %v2902_v46  ;;  %1398 = vst [vmem:[#allocation2 + $0x48] sm:$0xff] %v2902_v46  ;;  %v1032_v1 = vpop.f32.mrf.mxu1 }
 0x235   : > { %2276 = vpow2.f32 %v1273_v38  ;;  %v1254_v3 = vsub.f32 %v1028_v33, %v2902_v46  ;;  %v2907_v40 = vmax.f32 %v1077_v55, %v1023_v54  ;;  %v2909_v4 = vmax.f32 %v1080_v53, %v1038_v56 }
 0x236   : > { %2278 = vpow2.f32 %v1127_v57  ;;  %v1133_v11 = vmul.f32 1.442695, %v1110_v60  ;;  %v2917_v12 = vadd.f32 %v1032_v1, %v840_v2  ;;  %v2180_v37 = vpop.f32.mrf.mxu1  ;;  %v1154_v57 = vld [vmem:[#allocation3 + $0x40] sm:$0xff]  ;;  %v1153_v2 = vld [vmem:[#allocation3 + $0x10] sm:$0xff] }
 0x237   : > { %2280 = vpow2.f32 %v1271_v59  ;;  %v1277_v13 = vmul.f32 1.442695, %v1254_v3  ;;  %v1109_v14 = vsub.f32 %v1077_v55, %v2907_v40  ;;  %v1253_v48 = vsub.f32 %v1023_v54, %v2907_v40  ;;  %1397 = vst [vmem:[#allocation2 + $0x8] sm:$0xff] %v2907_v40  ;;  %1400 = vst [vmem:[#allocation2 + $0x20] sm:$0xff] %v2909_v4  ;;  %v1186_v59 = vld [vmem:[#allocation4 + $0x60] sm:$0xff] }
 0x238   : > { %v2259_v51 = vpop.eup %2258  ;;  %2282 = vpow2.f32 %v1133_v11  ;;  %v1112_v21 = vsub.f32 %v1080_v53, %v2909_v4  ;;  %v1256_v22 = vsub.f32 %v1038_v56, %v2909_v4  ;;  %v2927_v24 = vmax.f32 %v2911_v5, %v2917_v12  ;;  %v1218_v60 = vld [vmem:[#allocation5 + $0x40] sm:$0xff] }
 0x239   : > { %v2261_v25 = vpop.eup %2260  ;;  %v1168_v26 = vmul.f32 %v2259_v51, %v1152_v8  ;;  %v1200_v27 = vmul.f32 %v2259_v51, %v1184_v9  ;;  %v1232_v52 = vmul.f32 %v2259_v51, %v1216_v10  ;;  %2284 = vpow2.f32 %v1277_v13  ;;  %v1217_v51 = vld [vmem:[#allocation5 + $0x48] sm:$0xff] }
 0x23a   : > { %v2263_v29 = vpop.eup %2262  ;;  %v1296_v31 = vmul.f32 %v2261_v25, %v2915_v7  ;;  %v1131_v33 = vmul.f32 1.442695, %v1109_v14  ;;  %v1275_v34 = vmul.f32 1.442695, %v1253_v48  ;;  %v2930_v35 = vmul.f32 1.442695, %v1112_v21 }
 0x23b   : > { %1399 = vst [vmem:[#allocation2 + $0x40] sm:$0xff] %v2927_v24  ;;  %v2265_v38 = vpop.eup %2264  ;;  %v1167_v41 = vmul.f32 %v2263_v29, %v1151_v16  ;;  %v1199_v42 = vmul.f32 %v2263_v29, %v1183_v19  ;;  %v1231_v45 = vmul.f32 %v2263_v29, %v1215_v20  ;;  %v2933_v55 = vmul.f32 1.442695, %v1256_v22  ;;  %v1185_v48 = vld [vmem:[#allocation4 + $0x48] sm:$0xff]  ;;  %v2952_v16 = vpop.f32.mrf.mxu1 }
 0x23c   : > { %v1312_v53 = vmul.f32 %v1296_v31, %v2882_v17  ;;  %v2936_v54 = vadd.f32 %v1296_v31, %v1168_v26  ;;  %v1295_v56 = vmul.f32 %v2265_v38, %v2915_v7  ;;  %2286 = vpow2.f32 %v1131_v33  ;;  %v1156_v26 = vld [vmem:[#allocation3 + $0x30] sm:$0xff] }
 0x23d   : > { %v2267_v1 = vpop.eup %2266  ;;  %2288 = vpow2.f32 %v1275_v34  ;;  %v2943_v8 = vadd.f32 %v2180_v37, %v855_v50  ;;  %v1220_v37 = vld [vmem:[#allocation5] sm:$0xff] }
 0x23e   : > { %v2269_v9 = vpop.eup %2268  ;;  %v2945_v10 = vadd.f32 %v1312_v53, %v1200_v27  ;;  %v1360_v11 = vmul.f32 %v1312_v53, %v2882_v17  ;;  %1408 = vst [vmem:[#allocation3 + $0x68] sm:$0xff] %v2936_v54  ;;  %v1311_v13 = vmul.f32 %v1295_v56, %v2897_v30  ;;  %v2950_v14 = vadd.f32 %v1295_v56, %v1167_v41  ;;  %v1188_v27 = vld [vmem:[#allocation4 + $0x18] sm:$0xff] }
 0x23f   : > { %v2271_v19 = vpop.eup %2270  ;;  %v1170_v20 = vmul.f32 %v2267_v1, %v1154_v57  ;;  %v1202_v21 = vmul.f32 %v2267_v1, %v1186_v59  ;;  %v1234_v22 = vmul.f32 %v2267_v1, %v1218_v60  ;;  %v1298_v25 = vmul.f32 %v2269_v9, %v2915_v7  ;;  %v1155_v57 = vld [vmem:[#allocation3 + $0x48] sm:$0xff]  ;;  %v2970_v9 = vpop.f32.mrf.mxu1 }
 0x240   : > { %v2273_v29 = vpop.eup %2272  ;;  %v2955_v17 = vadd.f32 %v1360_v11, %v1232_v52  ;;  %1424 = vst [vmem:[#allocation4] sm:$0xff] %v2945_v10  ;;  %v2958_v31 = vadd.f32 %v1311_v13, %v1199_v42  ;;  %v1359_v33 = vmul.f32 %v1311_v13, %v2897_v30  ;;  %1407 = vst [vmem:[#allocation3 + $0x28] sm:$0xff] %v2950_v14  ;;  %v1187_v52 = vld [vmem:[#allocation4 + $0x68] sm:$0xff]  ;;  %2290 = vpow2.f32 %v2930_v35 }
 0x241   : > { %v1169_v34 = vmul.f32 %v2271_v19, %v1153_v2  ;;  %v2275_v38 = vpop.eup %2274  ;;  %v1314_v41 = vmul.f32 %v1298_v25, %v2865_v44  ;;  %v2963_v50 = vadd.f32 %v1298_v25, %v1170_v20  ;;  %v1201_v53 = vmul.f32 %v2271_v19, %v1185_v48  ;;  %v1219_v2 = vld [vmem:[#allocation5 + $0x28] sm:$0xff]  ;;  %v2977_v25 = vpop.permute.xlu0 %849 }
 0x242   : > { %3540 = vst [vmem:[#allocation9_spill] sm:$0xff] %v2955_v17  ;;  %v1233_v56 = vmul.f32 %v2271_v19, %v1217_v51  ;;  %v2277_v59 = vpop.eup %2276  ;;  %1440 = vst [vmem:[#allocation5 + $0x38] sm:$0xff] %v2955_v17  ;;  %v2966_v42 = vadd.f32 %v1359_v33, %v1231_v45  ;;  %v1297_v30 = vmul.f32 %v2273_v29, %v2915_v7  ;;  %v1158_v19 = vld [vmem:[#allocation3 + $0x38] sm:$0xff]  ;;  %2292 = vpow2.f32 %v2933_v55 }
 0x243   : > { %1423 = vst [vmem:[#allocation4 + $0x8] sm:$0xff] %v2958_v31  ;;  %v1172_v60 = vmul.f32 %v2275_v38, %v1156_v26  ;;  %v1204_v1 = vmul.f32 %v2275_v38, %v1188_v27  ;;  %v2279_v11 = vpop.eup %2278  ;;  %v2972_v13 = vadd.f32 %v1314_v41, %v1202_v21  ;;  %v1362_v48 = vmul.f32 %v1314_v41, %v2865_v44  ;;  %v1190_v33 = vld [vmem:[#allocation4 + $0x38] sm:$0xff] }
 0x244   : > { %3541 = vst [vmem:[#allocation10_spill] sm:$0xff] %v2966_v42  ;;  %1410 = vst [vmem:[#allocation3 + $0x40] sm:$0xff] %v2963_v50  ;;  %v1236_v51 = vmul.f32 %v2275_v38, %v1220_v37  ;;  %v1300_v45 = vmul.f32 %v2277_v59, %v2915_v7  ;;  %v2281_v20 = vpop.eup %2280  ;;  %v1313_v26 = vmul.f32 %v1297_v30, %v2870_v47 }
 0x245   : > { %3542 = vst [vmem:[#allocation11_spill] sm:$0xff] %v2972_v13  ;;  %1439 = vst [vmem:[#allocation5 + $0x18] sm:$0xff] %v2966_v42  ;;  %v2981_v27 = vadd.f32 %v1297_v30, %v1169_v34  ;;  %v1171_v29 = vmul.f32 %v2279_v11, %v1155_v57  ;;  %v1203_v21 = vmul.f32 %v2279_v11, %v1187_v52  ;;  %v2283_v44 = vpop.eup %2282  ;;  %v2994_v30 = vpop.f32.mrf.mxu1 }
 0x246   : > { %v2983_v41 = vadd.f32 %v1362_v48, %v1234_v22  ;;  %1426 = vst [vmem:[#allocation4 + $0x60] sm:$0xff] %v2972_v13  ;;  %v1316_v37 = vmul.f32 %v1300_v45, %v2852_v63  ;;  %v2987_v38 = vadd.f32 %v1300_v45, %v1172_v60  ;;  %v1235_v59 = vmul.f32 %v2279_v11, %v1219_v2  ;;  %v2285_v3 = vpop.eup %2284 }
 0x247   : > { %v2989_v17 = vadd.f32 %v1313_v26, %v1201_v53  ;;  %v1361_v34 = vmul.f32 %v1313_v26, %v2870_v47  ;;  %1409 = vst [vmem:[#allocation3 + $0x10] sm:$0xff] %v2981_v27  ;;  %v1299_v57 = vmul.f32 %v2281_v20, %v2915_v7  ;;  %v1174_v52 = vmul.f32 %v2283_v44, %v1158_v19  ;;  %v1157_v19 = vld [vmem:[#allocation3 + $0x70] sm:$0xff] }
 0x248   : > { %3543 = vst [vmem:[#allocation12_spill] sm:$0xff] %v2983_v41  ;;  %1442 = vst [vmem:[#allocation5 + $0x40] sm:$0xff] %v2983_v41  ;;  %v2997_v22 = vadd.f32 %v1316_v37, %v1204_v1  ;;  %v1364_v60 = vmul.f32 %v1316_v37, %v2852_v63  ;;  %v1206_v2 = vmul.f32 %v2283_v44, %v1190_v33  ;;  %v1189_v20 = vld [vmem:[#allocation4 + $0x10] sm:$0xff]  ;;  %v1221_v1 = vld [vmem:[#allocation5 + $0x8] sm:$0xff]  ;;  %v865_v41 = vpop.permute.xlu1 %864 }
 0x249   : > { %3544 = vst [vmem:[#allocation13_spill] sm:$0xff] %v2989_v17  ;;  %1412 = vst [vmem:[#allocation3 + $0x30] sm:$0xff] %v2987_v38  ;;  %v1238_v53 = vmul.f32 %v2283_v44, %v1222_v43  ;;  %v3001_v11 = vadd.f32 %v1361_v34, %v1233_v56  ;;  %v1315_v47 = vmul.f32 %v1299_v57, %v2857_v0  ;;  %v2287_v26 = vpop.eup %2286  ;;  %v860_v44 = vpop.permute.xlu0 %859 }
 0x24a   : > { %3545 = vst [vmem:[#allocation14_spill] sm:$0xff] %v2997_v22  ;;  %1425 = vst [vmem:[#allocation4 + $0x48] sm:$0xff] %v2989_v17  ;;  %v3005_v48 = vadd.f32 %v1299_v57, %v1171_v29  ;;  %v1302_v45 = vmul.f32 %v2285_v3, %v2915_v7  ;;  %v3008_v63 = vadd.f32 %v1364_v60, %v1236_v51  ;;  %v2289_v3 = vpop.eup %2288  ;;  %v2186_v57 = vpop.f32.mrf.mxu1  ;;  %v2325_v17 = vld [vmem:[%s2573_s19 + $0x78] sm:$0xff] }
 0x24b   : > { %3546 = vst [vmem:[#allocation15_spill] sm:$0xff] %v3001_v11  ;;  %1428 = vst [vmem:[#allocation4 + $0x18] sm:$0xff] %v2997_v22  ;;  %v3548_v43 = vsub.f32 %v2911_v5, %v2927_v24  ;;  %v3549_v29 = vsub.f32 %v2917_v12, %v2927_v24  ;;  %v3019_v37 = vadd.f32 %v1315_v47, %v1203_v21  ;;  %v1082_v5 = vld [vmem:[#allocation2 + $0x38] sm:$0xff]  ;;  %v1166_v22 = vld [vmem:[#allocation3 + $0x50] sm:$0xff] }
 0x24c   : > { %3547 = vst [vmem:[#allocation16_spill] sm:$0xff] %v3008_v63  ;;  %1441 = vst [vmem:[#allocation5 + $0x48] sm:$0xff] %v3001_v11  ;;  %v1363_v51 = vmul.f32 %v1315_v47, %v2857_v0  ;;  %v1318_v35 = vmul.f32 %v1302_v45, %v2842_v61  ;;  %v3024_v34 = vadd.f32 %v1302_v45, %v1174_v52 }
 0x24d   : > { %v1135_v56 = vmul.f32 1.442695, %v3548_v43  ;;  %v1279_v33 = vmul.f32 1.442695, %v3549_v29  ;;  %3550 = vst [vmem:[#allocation17_spill] sm:$0xff] %v3019_v37  ;;  %1411 = vst [vmem:[#allocation3 + $0x48] sm:$0xff] %v3005_v48  ;;  %v1173_v12 = vmul.f32 %v2287_v26, %v1157_v19  ;;  %v1205_v60 = vmul.f32 %v2287_v26, %v1189_v20  ;;  %v1062_v20 = vpop.f32.mrf.mxu1 }
 0x24e   : > { %1444 = vst [vmem:[#allocation5] sm:$0xff] %v3008_v63  ;;  %v1237_v43 = vmul.f32 %v2287_v26, %v1221_v1  ;;  %v1301_v29 = vmul.f32 %v2289_v3, %v2915_v7  ;;  %v3028_v11 = vadd.f32 %v1363_v51, %v1235_v59  ;;  %1427 = vst [vmem:[#allocation4 + $0x68] sm:$0xff] %v3019_v37  ;;  %v1081_v59 = vld [vmem:[#allocation2 + $0x10] sm:$0xff]  ;;  %v875_v1 = vpop.permute.xlu1 %874  ;;  %v1086_v51 = vld [vmem:[#allocation2 + $0x28] sm:$0xff] }
 0x24f   : > { %v3031_v0 = vadd.f32 %v1318_v35, %v1206_v2  ;;  %v1366_v21 = vmul.f32 %v1318_v35, %v2842_v61  ;;  %1414 = vst [vmem:[#allocation3 + $0x38] sm:$0xff] %v3024_v34  ;;  %2294 = vpow2.f32 %v1135_v56  ;;  %v3040_v45 = vmax.f32 %v1082_v5, %v2943_v8  ;;  %v1084_v19 = vld [vmem:[#allocation2 + $0x70] sm:$0xff]  ;;  %v1085_v35 = vld [vmem:[#allocation2 + $0x78] sm:$0xff] }
 0x250   : > { %3551 = vst [vmem:[#allocation18_spill] sm:$0xff] %v3028_v11  ;;  %v1317_v52 = vmul.f32 %v1301_v29, %v2847_v62  ;;  %v3037_v47 = vadd.f32 %v1301_v29, %v1173_v12  ;;  %1443 = vst [vmem:[#allocation5 + $0x28] sm:$0xff] %v3028_v11  ;;  %2296 = vpow2.f32 %v1279_v33  ;;  %v1043_v61 = vadd.f32 %v2952_v16, %v2977_v25  ;;  %v870_v33 = vpop.permute.xlu0 %869 }
 0x251   : > { %3552 = vst [vmem:[#allocation19_spill] sm:$0xff] %v3031_v0  ;;  %v3043_v2 = vadd.f32 %v1366_v21, %v1238_v53  ;;  %1430 = vst [vmem:[#allocation4 + $0x38] sm:$0xff] %v3031_v0  ;;  %v1058_v55 = vadd.f32 %v2970_v9, %v865_v41  ;;  %v1114_v3 = vsub.f32 %v1082_v5, %v3040_v45  ;;  %v1083_v41 = vld [vmem:[#allocation2 + $0x60] sm:$0xff] }
 0x252   : > { %v3049_v26 = vadd.f32 %v1317_v52, %v1205_v60  ;;  %v1365_v56 = vmul.f32 %v1317_v52, %v2847_v62  ;;  %1413 = vst [vmem:[#allocation3 + $0x70] sm:$0xff] %v3037_v47  ;;  %v1258_v53 = vsub.f32 %v2943_v8, %v3040_v45  ;;  %1402 = vst [vmem:[#allocation2 + $0x38] sm:$0xff] %v3040_v45 }
 0x253   : > { %3553 = vst [vmem:[#allocation20_spill] sm:$0xff] %v3043_v2  ;;  %1446 = vst [vmem:[#allocation5 + $0x70] sm:$0xff] %v3043_v2  ;;  %v3058_v16 = vmax.f32 %v1081_v59, %v1043_v61  ;;  %v3060_v9 = vmax.f32 %v1084_v19, %v1058_v55  ;;  %v1053_v25 = vadd.f32 %v2994_v30, %v860_v44  ;;  %v1141_v8 = vmul.f32 1.442695, %v1114_v3  ;;  %v1160_v44 = vld [vmem:[#allocation3 + $0x78] sm:$0xff] }
 0x254   : > { %3554 = vst [vmem:[#allocation21_spill] sm:$0xff] %v3049_v26  ;;  %v1068_v62 = vadd.f32 %v2186_v57, %v875_v1  ;;  %v3063_v12 = vadd.f32 %v1365_v56, %v1237_v43  ;;  %1429 = vst [vmem:[#allocation4 + $0x10] sm:$0xff] %v3049_v26  ;;  %v1285_v5 = vmul.f32 1.442695, %v1258_v53  ;;  %v1063_v60 = vadd.f32 %v1062_v20, %v870_v33  ;;  %v2291_v53 = vpop.eup %2290 }
 0x255   : > { %v1113_v29 = vsub.f32 %v1081_v59, %v3058_v16  ;;  %v1257_v21 = vsub.f32 %v1043_v61, %v3058_v16  ;;  %1401 = vst [vmem:[#allocation2 + $0x10] sm:$0xff] %v3058_v16  ;;  %v1116_v52 = vsub.f32 %v1084_v19, %v3060_v9  ;;  %v1260_v30 = vsub.f32 %v1058_v55, %v3060_v9 }
 0x256   : > { %3555 = vst [vmem:[#allocation22_spill] sm:$0xff] %v3063_v12  ;;  %1404 = vst [vmem:[#allocation2 + $0x70] sm:$0xff] %v3060_v9  ;;  %2298 = vpow2.f32 %v1141_v8  ;;  %v3073_v57 = vmax.f32 %v1083_v41, %v1053_v25  ;;  %v3075_v43 = vmax.f32 %v1086_v51, %v1068_v62  ;;  %v3077_v20 = vmax.f32 %v1085_v35, %v1063_v60 }
 0x257   : > { %1445 = vst [vmem:[#allocation5 + $0x8] sm:$0xff] %v3063_v12  ;;  %2300 = vpow2.f32 %v1285_v5  ;;  %v1139_v59 = vmul.f32 1.442695, %v1113_v29  ;;  %v1283_v61 = vmul.f32 1.442695, %v1257_v21  ;;  %v1176_v8 = vmul.f32 %v2291_v53, %v1160_v44  ;;  %v1192_v5 = vld [vmem:[#allocation4 + $0x28] sm:$0xff] }
 0x258   : > { %v1145_v1 = vmul.f32 1.442695, %v1116_v52  ;;  %v1289_v56 = vmul.f32 1.442695, %v1260_v30  ;;  %v1115_v19 = vsub.f32 %v1083_v41, %v3073_v57  ;;  %v1259_v55 = vsub.f32 %v1053_v25, %v3073_v57  ;;  %1403 = vst [vmem:[#allocation2 + $0x60] sm:$0xff] %v3073_v57  ;;  %1406 = vst [vmem:[#allocation2 + $0x28] sm:$0xff] %v3075_v43  ;;  %v2293_v30 = vpop.eup %2292 }
 0x259   : > { %v1118_v3 = vsub.f32 %v1086_v51, %v3075_v43  ;;  %1405 = vst [vmem:[#allocation2 + $0x78] sm:$0xff] %v3077_v20  ;;  %2302 = vpow2.f32 %v1139_v59  ;;  %v1262_v33 = vsub.f32 %v1068_v62, %v3075_v43  ;;  %v1159_v29 = vld [vmem:[#allocation3 + $0x20] sm:$0xff]  ;;  %v1117_v41 = vsub.f32 %v1085_v35, %v3077_v20 }
 0x25a   : > { %2304 = vpow2.f32 %v1283_v61  ;;  %v1261_v25 = vsub.f32 %v1063_v60, %v3077_v20  ;;  %v1143_v21 = vmul.f32 1.442695, %v1115_v19  ;;  %v1287_v52 = vmul.f32 1.442695, %v1259_v55  ;;  %v1224_v35 = vld [vmem:[#allocation5 + $0x60] sm:$0xff] }
 0x25b   : > { %2306 = vpow2.f32 %v1145_v1  ;;  %v1149_v51 = vmul.f32 1.442695, %v1118_v3  ;;  %v640_v2 = vsel %vm628_vm0, %v2624_v36, 0.0  ;;  %v1293_v59 = vmul.f32 1.442695, %v1262_v33  ;;  %v1191_v1 = vld [vmem:[#allocation4 + $0x40] sm:$0xff] }
 0x25c   : > { %2308 = vpow2.f32 %v1289_v56  ;;  %v2295_v62 = vpop.eup %2294  ;;  %v639_v44 = vsel %vm628_vm0, %v2637_v39, 0.0  ;;  %v1208_v61 = vmul.f32 %v2291_v53, %v1192_v5  ;;  %v1304_v60 = vmul.f32 %v2293_v30, %v2915_v7  ;;  %v1223_v56 = vld [vmem:[#allocation5 + $0x68] sm:$0xff] }
 0x25d   : > { %2310 = vpow2.f32 %v1143_v21  ;;  %v2297_v19 = vpop.eup %2296  ;;  %v1175_v55 = vmul.f32 %v2295_v62, %v1159_v29  ;;  %v1147_v3 = vmul.f32 1.442695, %v1117_v41  ;;  %v1291_v12 = vmul.f32 1.442695, %v1261_v25  ;;  %v1162_v41 = vld [vmem:[#allocation3 + $0x58] sm:$0xff] }
 0x25e   : > { %2312 = vpow2.f32 %v1287_v52  ;;  %v1320_v63 = vmul.f32 %v1304_v60, %v640_v2  ;;  %v3095_v36 = vadd.f32 %v1304_v60, %v1176_v8  ;;  %v1303_v33 = vmul.f32 %v2297_v19, %v2915_v7 }
 0x25f   : > { %2314 = vpow2.f32 %v1149_v51  ;;  %v1240_v11 = vmul.f32 %v2291_v53, %v1224_v35  ;;  %v1207_v39 = vmul.f32 %v2295_v62, %v1191_v1  ;;  %v1239_v25 = vmul.f32 %v2295_v62, %v1223_v56  ;;  %v1194_v62 = vld [vmem:[#allocation4 + $0x20] sm:$0xff]  ;;  %v1226_v1 = vld [vmem:[#allocation5 + $0x30] sm:$0xff] }
 0x260   : > { %2316 = vpow2.f32 %v1293_v59  ;;  %v3098_v5 = vadd.f32 %v1320_v63, %v1208_v61  ;;  %v1368_v30 = vmul.f32 %v1320_v63, %v640_v2  ;;  %1416 = vst [vmem:[#allocation3 + $0x78] sm:$0xff] %v3095_v36  ;;  %v1319_v21 = vmul.f32 %v1303_v33, %v639_v44  ;;  %v1161_v61 = vld [vmem:[#allocation3 + $0x18] sm:$0xff] }
 0x261   : > { %v3101_v29 = vadd.f32 %v1303_v33, %v1175_v55  ;;  %2318 = vpow2.f32 %v1147_v3  ;;  %v642_v2 = vsel %vm628_vm0, %v2604_v32, 0.0  ;;  %v1164_v32 = vld [vmem:[#allocation3 + $0x8] sm:$0xff] }
 0x262   : > { %3556 = vst [vmem:[#allocation23_spill] sm:$0xff] %v3098_v5  ;;  %v3103_v52 = vadd.f32 %v1368_v30, %v1240_v11  ;;  %1432 = vst [vmem:[#allocation4 + $0x28] sm:$0xff] %v3098_v5  ;;  %v3106_v53 = vadd.f32 %v1319_v21, %v1207_v39  ;;  %v1367_v51 = vmul.f32 %v1319_v21, %v639_v44  ;;  %2320 = vpow2.f32 %v1291_v12  ;;  %v2322_v12 = vld [vmem:[%s2573_s19 + $0x50] sm:$0xff]  ;;  %v2323_v21 = vld [vmem:[%s2573_s19 + $0x68] sm:$0xff] }
 0x263   : > { %v2299_v8 = vpop.eup %2298  ;;  %1415 = vst [vmem:[#allocation3 + $0x20] sm:$0xff] %v3101_v29  ;;  %v641_v60 = vsel %vm628_vm0, %v2322_v12, 0.0  ;;  %v1193_v39 = vld [vmem:[#allocation4 + $0x70] sm:$0xff] }
 0x264   : > { %3557 = vst [vmem:[#allocation24_spill] sm:$0xff] %v3103_v52  ;;  %3558 = vst [vmem:[#allocation25_spill] sm:$0xff] %v3106_v53  ;;  %v2301_v63 = vpop.eup %2300  ;;  %v1178_v59 = vmul.f32 %v2299_v8, %v1162_v41  ;;  %v3113_v11 = vadd.f32 %v1367_v51, %v1239_v25  ;;  %v1210_v55 = vmul.f32 %v2299_v8, %v1194_v62  ;;  %v644_v41 = vsel %vm628_vm0, %v2323_v21, 0.0  ;;  %v2324_v25 = vld [vmem:[%s2573_s19 + $0x60] sm:$0xff] }
 0x265   : > { %1448 = vst [vmem:[#allocation5 + $0x60] sm:$0xff] %v3103_v52  ;;  %1431 = vst [vmem:[#allocation4 + $0x40] sm:$0xff] %v3106_v53  ;;  %v1306_v44 = vmul.f32 %v2301_v63, %v2915_v7  ;;  %v3129_v51 = vsel %vm628_vm0, %v2324_v25, 0.0  ;;  %v1225_v63 = vld [vmem:[#allocation5 + $0x78] sm:$0xff]  ;;  %v1196_v52 = vld [vmem:[#allocation4 + $0x30] sm:$0xff] }
 0x266   : > { %3559 = vst [vmem:[#allocation26_spill] sm:$0xff] %v3113_v11  ;;  %v2303_v35 = vpop.eup %2302  ;;  %1447 = vst [vmem:[#allocation5 + $0x68] sm:$0xff] %v3113_v11  ;;  %v1163_v62 = vld [vmem:[#allocation3] sm:$0xff] }
 0x267   : > { %v2305_v19 = vpop.eup %2304  ;;  %v1322_v3 = vmul.f32 %v1306_v44, %v642_v2  ;;  %v3121_v56 = vadd.f32 %v1306_v44, %v1178_v59  ;;  %v1177_v33 = vmul.f32 %v2303_v35, %v1161_v61  ;;  %v1242_v59 = vmul.f32 %v2299_v8, %v1226_v1  ;;  %v1228_v25 = vld [vmem:[#allocation5 + $0x20] sm:$0xff] }
 0x268   : > { %v2307_v30 = vpop.eup %2306  ;;  %v1305_v12 = vmul.f32 %v2305_v19, %v2915_v7  ;;  %v1209_v21 = vmul.f32 %v2303_v35, %v1193_v39  ;;  %v1241_v8 = vmul.f32 %v2303_v35, %v1225_v63 }
 0x269   : > { %v2309_v11 = vpop.eup %2308  ;;  %v3132_v44 = vadd.f32 %v1322_v3, %v1210_v55  ;;  %v1370_v61 = vmul.f32 %v1322_v3, %v642_v2  ;;  %1418 = vst [vmem:[#allocation3 + $0x58] sm:$0xff] %v3121_v56  ;;  %v1180_v42 = vmul.f32 %v2307_v30, %v1164_v32  ;;  %v1212_v2 = vmul.f32 %v2307_v30, %v1196_v52 }
 0x26a   : > { %v2311_v5 = vpop.eup %2310  ;;  %v1321_v53 = vmul.f32 %v1305_v12, %v641_v60  ;;  %v3135_v0 = vadd.f32 %v1305_v12, %v1177_v33  ;;  %v1308_v26 = vmul.f32 %v2309_v11, %v2915_v7  ;;  %v1195_v11 = vld [vmem:[#allocation4 + $0x58] sm:$0xff]  ;;  %v1244_v52 = vmul.f32 %v2307_v30, %v1228_v25 }
 0x26b   : > { %v2313_v19 = vpop.eup %2312  ;;  %v3138_v37 = vadd.f32 %v1370_v61, %v1242_v59  ;;  %1434 = vst [vmem:[#allocation4 + $0x20] sm:$0xff] %v3132_v44  ;;  %v1179_v1 = vmul.f32 %v2311_v5, %v1163_v62  ;;  %v1198_v12 = vld [vmem:[#allocation4 + $0x78] sm:$0xff]  ;;  %v646_v59 = vsel %vm628_vm0, %v2325_v17, 0.0  ;;  %v1165_v62 = vld [vmem:[#allocation3 + $0x60] sm:$0xff] }
 0x26c   : > { %v2315_v55 = vpop.eup %2314  ;;  %v3141_v32 = vadd.f32 %v1321_v53, %v1209_v21  ;;  %v1369_v3 = vmul.f32 %v1321_v53, %v641_v60  ;;  %1417 = vst [vmem:[#allocation3 + $0x18] sm:$0xff] %v3135_v0  ;;  %v1324_v33 = vmul.f32 %v1308_v26, %v644_v41  ;;  %v3144_v39 = vadd.f32 %v1308_v26, %v1180_v42  ;;  %v1227_v60 = vld [vmem:[#allocation5 + $0x50] sm:$0xff] }
 0x26d   : > { %3560 = vst [vmem:[#allocation27_spill] sm:$0xff] %v3138_v37  ;;  %v2317_v13 = vpop.eup %2316  ;;  %1450 = vst [vmem:[#allocation5 + $0x30] sm:$0xff] %v3138_v37  ;;  %v1307_v35 = vmul.f32 %v2313_v19, %v2915_v7  ;;  %v1182_v63 = vmul.f32 %v2315_v55, %v1166_v22  ;;  %v1211_v21 = vmul.f32 %v2311_v5, %v1195_v11  ;;  %v1230_v19 = vld [vmem:[#allocation5 + $0x10] sm:$0xff] }
 0x26e   : > { %v3151_v53 = vadd.f32 %v1369_v3, %v1241_v8  ;;  %1433 = vst [vmem:[#allocation4 + $0x70] sm:$0xff] %v3141_v32  ;;  %v3154_v42 = vadd.f32 %v1324_v33, %v1212_v2  ;;  %v1372_v26 = vmul.f32 %v1324_v33, %v644_v41  ;;  %1420 = vst [vmem:[#allocation3 + $0x8] sm:$0xff] %v3144_v39  ;;  %v2319_v61 = vpop.eup %2318 }
 0x26f   : > { %v1310_v17 = vmul.f32 %v2317_v13, %v2915_v7  ;;  %v1323_v30 = vmul.f32 %v1307_v35, %v3129_v51  ;;  %v3159_v25 = vadd.f32 %v1307_v35, %v1179_v1  ;;  %v1214_v22 = vmul.f32 %v2315_v55, %v1198_v12  ;;  %v2321_v8 = vpop.eup %2320  ;;  %v2326_v13 = vld [vmem:[%s2573_s19 + $0x70] sm:$0xff] }
 0x270   : > { %1449 = vst [vmem:[#allocation5 + $0x78] sm:$0xff] %v3151_v53  ;;  %v3162_v2 = vadd.f32 %v1372_v26, %v1244_v52  ;;  %1436 = vst [vmem:[#allocation4 + $0x30] sm:$0xff] %v3154_v42  ;;  %v1181_v33 = vmul.f32 %v2319_v61, %v1165_v62  ;;  %v645_v11 = vsel %vm628_vm0, %v2326_v13, 0.0  ;;  %v1243_v37 = vmul.f32 %v2311_v5, %v1227_v60  ;;  %v1197_v35 = vld [vmem:[#allocation4 + $0x50] sm:$0xff]  ;;  %v1229_v5 = vld [vmem:[#allocation5 + $0x58] sm:$0xff] }
 0x271   : > { %v1326_v41 = vmul.f32 %v1310_v17, %v646_v59  ;;  %v3165_v3 = vadd.f32 %v1310_v17, %v1182_v63  ;;  %v3170_v1 = vadd.f32 %v1323_v30, %v1211_v21  ;;  %v1371_v12 = vmul.f32 %v1323_v30, %v3129_v51  ;;  %1419 = vst [vmem:[#allocation3] sm:$0xff] %v3159_v25 }
 0x272   : > { %1452 = vst [vmem:[#allocation5 + $0x20] sm:$0xff] %v3162_v2  ;;  %v1246_v52 = vmul.f32 %v2315_v55, %v1230_v19  ;;  %v1309_v62 = vmul.f32 %v2321_v8, %v2915_v7  ;;  %v1213_v51 = vmul.f32 %v2319_v61, %v1197_v35  ;;  %v1245_v55 = vmul.f32 %v2319_v61, %v1229_v5 }
 0x273   : > { %v3175_v26 = vadd.f32 %v1326_v41, %v1214_v22  ;;  %v1374_v63 = vmul.f32 %v1326_v41, %v646_v59  ;;  %1422 = vst [vmem:[#allocation3 + $0x50] sm:$0xff] %v3165_v3  ;;  %v3179_v23 = vadd.f32 %v1371_v12, %v1243_v37  ;;  %1435 = vst [vmem:[#allocation4 + $0x58] sm:$0xff] %v3170_v1 }
 0x274   : > { %v1325_v17 = vmul.f32 %v1309_v62, %v645_v11  ;;  %v3185_v21 = vadd.f32 %v1309_v62, %v1181_v33 }
 0x275   : > { %v3182_v60 = vadd.f32 %v1374_v63, %v1246_v52  ;;  %1438 = vst [vmem:[#allocation4 + $0x78] sm:$0xff] %v3175_v26  ;;  %1451 = vst [vmem:[#allocation5 + $0x50] sm:$0xff] %v3179_v23 }
 0x276   : > { %v3189_v59 = vadd.f32 %v1325_v17, %v1213_v51  ;;  %v1373_v7 = vmul.f32 %v1325_v17, %v645_v11  ;;  %1421 = vst [vmem:[#allocation3 + $0x60] sm:$0xff] %v3185_v21  ;;  %1458 = sbr.rel (%p2069_p0) target bundleno = 1028 (0x404), region = 86 }
 0x277   : > { %1454 = vst [vmem:[#allocation5 + $0x10] sm:$0xff] %v3182_v60 }
 0x278   : > { %v3192_v37 = vadd.f32 %v1373_v7, %v1245_v55  ;;  %1437 = vst [vmem:[#allocation4 + $0x50] sm:$0xff] %v3189_v59 }
 0x27a   : > { %1453 = vst [vmem:[#allocation5 + $0x58] sm:$0xff] %v3192_v37 }
 0x27b   : > { %1459 = vmax.xlane.f32.xlu0 %v2837_v58  ;;  %1463 = vmax.xlane.f32.xlu1 %v2877_v15  ;;  %vm1539_vm2 = vcmask 7168  }
 0x27f   : > { %1461 = vmax.xlane.f32.xlu0 %v2832_v49  ;;  %1465 = vmax.xlane.f32.xlu1 %v2872_v6 }
 0x283   : > { %1467 = vmax.xlane.f32.xlu0 %v2892_v28  ;;  %1469 = vmax.xlane.f32.xlu1 %v2884_v18 }
 0x287   : > { %1471 = vmax.xlane.f32.xlu0 %v2907_v40  ;;  %1473 = vmax.xlane.f32.xlu1 %v2902_v46 }
 0x28b   : > { %1475 = vmax.xlane.f32.xlu0 %v2927_v24  ;;  %1477 = vmax.xlane.f32.xlu1 %v2909_v4 }
 0x28f   : > { %1479 = vmax.xlane.f32.xlu0 %v3058_v16  ;;  %1481 = vmax.xlane.f32.xlu1 %v3040_v45 }
 0x293   : > { %1483 = vmax.xlane.f32.xlu0 %v3073_v57  ;;  %1485 = vmax.xlane.f32.xlu1 %v3060_v9 }
 0x297   : > { %1487 = vmax.xlane.f32.xlu0 %v3077_v20  ;;  %1489 = vmax.xlane.f32.xlu1 %v3075_v43 }
 0x304   : > { %v1460_v61 = vpop.xlane.xlu0 %1459  ;;  %v1464_v30 = vpop.xlane.xlu1 %1463 }
 0x305   : > { %v1491_v22 = vsub.f32 %v2837_v58, %v1460_v61  ;;  %1540 = vst.msk [vmem:[%s2556_s25] sm:$0xff] %vm1539_vm2, %v1460_v61  ;;  %v1493_v19 = vsub.f32 %v2877_v15, %v1464_v30  ;;  %1542 = vst.msk [vmem:[%s2556_s25 + $0x10] sm:$0xff] %vm1539_vm2, %v1464_v30 }
 0x307   : > { %v1507_v8 = vmul.f32 1.442695, %v1491_v22  ;;  %v1511_v41 = vmul.f32 1.442695, %v1493_v19 }
 0x308   : > { %v1462_v33 = vpop.xlane.xlu0 %1461  ;;  %v1466_v13 = vpop.xlane.xlu1 %1465 }
 0x309   : > { %2327 = vpow2.f32 %v1507_v8  ;;  %v1492_v11 = vsub.f32 %v2832_v49, %v1462_v33  ;;  %1541 = vst.msk [vmem:[%s2556_s25 + $0x8] sm:$0xff] %vm1539_vm2, %v1462_v33  ;;  %v1494_v12 = vsub.f32 %v2872_v6, %v1466_v13  ;;  %1543 = vst.msk [vmem:[%s2556_s25 + $0x18] sm:$0xff] %vm1539_vm2, %v1466_v13 }
 0x30a   : > { %2329 = vpow2.f32 %v1511_v41 }
 0x30b   : > { %v1509_v58 = vmul.f32 1.442695, %v1492_v11  ;;  %v1513_v15 = vmul.f32 1.442695, %v1494_v12 }
 0x30c   : > { %v1468_v35 = vpop.xlane.xlu0 %1467  ;;  %v1470_v52 = vpop.xlane.xlu1 %1469 }
 0x30d   : > { %2331 = vpow2.f32 %v1509_v58  ;;  %v1495_v63 = vsub.f32 %v2892_v28, %v1468_v35  ;;  %1544 = vst.msk [vmem:[%s2556_s25 + $0x20] sm:$0xff] %vm1539_vm2, %v1468_v35  ;;  %v1496_v49 = vsub.f32 %v2884_v18, %v1470_v52  ;;  %1545 = vst.msk [vmem:[%s2556_s25 + $0x28] sm:$0xff] %vm1539_vm2, %v1470_v52 }
 0x30e   : > { %2333 = vpow2.f32 %v1513_v15 }
 0x30f   : > { %v1515_v6 = vmul.f32 1.442695, %v1495_v63  ;;  %v1517_v62 = vmul.f32 1.442695, %v1496_v49 }
 0x310   : > { %v1472_v5 = vpop.xlane.xlu0 %1471  ;;  %v1474_v51 = vpop.xlane.xlu1 %1473 }
 0x311   : > { %2335 = vpow2.f32 %v1515_v6  ;;  %v1497_v17 = vsub.f32 %v2907_v40, %v1472_v5  ;;  %1546 = vst.msk [vmem:[%s2556_s25 + $0x30] sm:$0xff] %vm1539_vm2, %v1472_v5  ;;  %v1498_v28 = vsub.f32 %v2902_v46, %v1474_v51  ;;  %1547 = vst.msk [vmem:[%s2556_s25 + $0x38] sm:$0xff] %vm1539_vm2, %v1474_v51 }
 0x312   : > { %2337 = vpow2.f32 %v1517_v62 }
 0x313   : > { %v1519_v18 = vmul.f32 1.442695, %v1497_v17  ;;  %v1521_v55 = vmul.f32 1.442695, %v1498_v28 }
 0x314   : > { %v1476_v7 = vpop.xlane.xlu0 %1475  ;;  %v1478_v61 = vpop.xlane.xlu1 %1477 }
 0x315   : > { %2339 = vpow2.f32 %v1519_v18  ;;  %v1499_v30 = vsub.f32 %v2927_v24, %v1476_v7  ;;  %1548 = vst.msk [vmem:[%s2556_s25 + $0x40] sm:$0xff] %vm1539_vm2, %v1476_v7  ;;  %v1500_v40 = vsub.f32 %v2909_v4, %v1478_v61  ;;  %1549 = vst.msk [vmem:[%s2556_s25 + $0x48] sm:$0xff] %vm1539_vm2, %v1478_v61 }
 0x316   : > { %v3243_v22 = vpop.eup %2327  ;;  %2341 = vpow2.f32 %v1521_v55 }
 0x317   : > { %v3245_v46 = vpop.eup %2329  ;;  %v1523_v19 = vmul.f32 1.442695, %v1499_v30  ;;  %v1525_v8 = vmul.f32 1.442695, %v1500_v40  ;;  %v1556_v41 = vmul.f32 %v3243_v22, %v2950_v14 }
 0x318   : > { %v1480_v33 = vpop.xlane.xlu0 %1479  ;;  %v1482_v13 = vpop.xlane.xlu1 %1481  ;;  %v1558_v11 = vmul.f32 %v3245_v46, %v2981_v27 }
 0x319   : > { %2343 = vpow2.f32 %v1523_v19  ;;  %v1501_v24 = vsub.f32 %v3058_v16, %v1480_v33  ;;  %1550 = vst.msk [vmem:[%s2556_s25 + $0x50] sm:$0xff] %vm1539_vm2, %v1480_v33  ;;  %1572 = vadd.xlane.f32.xlu0 %v1556_v41  ;;  %v1502_v4 = vsub.f32 %v3040_v45, %v1482_v13  ;;  %1551 = vst.msk [vmem:[%s2556_s25 + $0x58] sm:$0xff] %vm1539_vm2, %v1482_v13 }
 0x31a   : > { %v3257_v12 = vpop.eup %2331  ;;  %2345 = vpow2.f32 %v1525_v8 }
 0x31b   : > { %v3259_v14 = vpop.eup %2333  ;;  %v1527_v58 = vmul.f32 1.442695, %v1501_v24  ;;  %v1529_v15 = vmul.f32 1.442695, %v1502_v4  ;;  %v1557_v16 = vmul.f32 %v3257_v12, %v2936_v54  ;;  %v3561_v24 = vld [vmem:[#allocation13_spill] sm:$0xff] }
 0x31c   : > { %v1484_v35 = vpop.xlane.xlu0 %1483  ;;  %v1486_v52 = vpop.xlane.xlu1 %1485  ;;  %v1559_v63 = vmul.f32 %v3259_v14, %v2963_v50  ;;  %v1622_v4 = vmul.f32 %v3245_v46, %v3561_v24 }
 0x31d   : > { %2347 = vpow2.f32 %v1527_v58  ;;  %v1503_v45 = vsub.f32 %v3073_v57, %v1484_v35  ;;  %1552 = vst.msk [vmem:[%s2556_s25 + $0x60] sm:$0xff] %vm1539_vm2, %v1484_v35  ;;  %1576 = vadd.xlane.f32.xlu0 %v1558_v11  ;;  %1574 = vadd.xlane.f32.xlu1 %v1557_v16  ;;  %v1504_v27 = vsub.f32 %v3060_v9, %v1486_v52  ;;  %1553 = vst.msk [vmem:[%s2556_s25 + $0x68] sm:$0xff] %vm1539_vm2, %v1486_v52  ;;  %v3562_v11 = vld [vmem:[#allocation11_spill] sm:$0xff]  ;;  %v3563_v58 = vld [vmem:[#allocation17_spill] sm:$0xff] }
 0x31e   : > { %v3271_v49 = vpop.eup %2335  ;;  %2349 = vpow2.f32 %v1529_v15  ;;  %v3565_v16 = vld [vmem:[#allocation21_spill] sm:$0xff] }
 0x31f   : > { %v3273_v54 = vpop.eup %2337  ;;  %v1531_v6 = vmul.f32 1.442695, %v1503_v45  ;;  %v1533_v57 = vmul.f32 1.442695, %v1504_v27  ;;  %v1560_v62 = vmul.f32 %v3271_v49, %v3005_v48  ;;  %v1624_v15 = vmul.f32 %v3271_v49, %v3563_v58  ;;  %v3567_v45 = vld [vmem:[#allocation25_spill] sm:$0xff] }
 0x320   : > { %v1488_v5 = vpop.xlane.xlu0 %1487  ;;  %v1490_v51 = vpop.xlane.xlu1 %1489  ;;  %v1561_v17 = vmul.f32 %v3273_v54, %v2987_v38 }
 0x321   : > { %2351 = vpow2.f32 %v1531_v6  ;;  %v1505_v9 = vsub.f32 %v3077_v20, %v1488_v5  ;;  %1554 = vst.msk [vmem:[%s2556_s25 + $0x70] sm:$0xff] %vm1539_vm2, %v1488_v5  ;;  %1578 = vadd.xlane.f32.xlu1 %v1559_v63  ;;  %1580 = vadd.xlane.f32.xlu0 %v1560_v62  ;;  %v1506_v50 = vsub.f32 %v3075_v43, %v1490_v51  ;;  %1555 = vst.msk [vmem:[%s2556_s25 + $0x78] sm:$0xff] %vm1539_vm2, %v1490_v51  ;;  %v3568_v63 = vld [vmem:[#allocation23_spill] sm:$0xff] }
 0x322   : > { %v3285_v28 = vpop.eup %2339  ;;  %2353 = vpow2.f32 %v1533_v57 }
 0x323   : > { %v3287_v48 = vpop.eup %2341  ;;  %v1535_v18 = vmul.f32 1.442695, %v1505_v9  ;;  %v1537_v55 = vmul.f32 1.442695, %v1506_v50  ;;  %v1562_v20 = vmul.f32 %v3285_v28, %v3037_v47  ;;  %v1626_v35 = vmul.f32 %v3285_v28, %v3565_v16  ;;  %v3569_v50 = vld [vmem:[#allocation10_spill] sm:$0xff] }
 0x324   : > { %v1563_v43 = vmul.f32 %v3287_v48, %v3024_v34 }
 0x325   : > { %2355 = vpow2.f32 %v1535_v18  ;;  %1582 = vadd.xlane.f32.xlu1 %v1561_v17  ;;  %1584 = vadd.xlane.f32.xlu0 %v1562_v20  ;;  %v1684_v17 = vmul.f32 %v3243_v22, %v3569_v50  ;;  %v3571_v18 = vld [vmem:[#allocation15_spill] sm:$0xff]  ;;  %v3573_v20 = vld [vmem:[#allocation18_spill] sm:$0xff] }
 0x326   : > { %v3293_v7 = vpop.eup %2343  ;;  %2357 = vpow2.f32 %v1537_v55  ;;  %v1686_v55 = vmul.f32 %v3245_v46, %v3571_v18 }
 0x327   : > { %v3295_v38 = vpop.eup %2345  ;;  %v1564_v61 = vmul.f32 %v3293_v7, %v3101_v29  ;;  %v1628_v27 = vmul.f32 %v3293_v7, %v3567_v45 }
 0x328   : > { %v1565_v30 = vmul.f32 %v3295_v38, %v3095_v36  ;;  %v1629_v6 = vmul.f32 %v3295_v38, %v3568_v63 }
 0x329   : > { %1586 = vadd.xlane.f32.xlu1 %v1563_v43  ;;  %1588 = vadd.xlane.f32.xlu0 %v1564_v61  ;;  %v1688_v43 = vmul.f32 %v3271_v49, %v3573_v20  ;;  %v3575_v61 = vld [vmem:[#allocation22_spill] sm:$0xff] }
 0x32a   : > { %v3301_v47 = vpop.eup %2347 }
 0x32b   : > { %v3303_v40 = vpop.eup %2349  ;;  %v1566_v34 = vmul.f32 %v3301_v47, %v3135_v0  ;;  %v1630_v57 = vmul.f32 %v3301_v47, %v3141_v32 }
 0x32c   : > { %v1567_v19 = vmul.f32 %v3303_v40, %v3121_v56  ;;  %v1631_v62 = vmul.f32 %v3303_v40, %v3132_v44  ;;  %v3570_v44 = vld [vmem:[#allocation9_spill] sm:$0xff] }
 0x32d   : > { %1590 = vadd.xlane.f32.xlu1 %v1565_v30  ;;  %1592 = vadd.xlane.f32.xlu0 %v1566_v34  ;;  %v1690_v30 = vmul.f32 %v3285_v28, %v3575_v61  ;;  %v3577_v34 = vld [vmem:[#allocation26_spill] sm:$0xff]  ;;  %v3579_v28 = vld [vmem:[#allocation27_spill] sm:$0xff] }
 0x32e   : > { %v3309_v8 = vpop.eup %2351 }
 0x32f   : > { %v3311_v29 = vpop.eup %2353  ;;  %v1568_v41 = vmul.f32 %v3309_v8, %v3159_v25  ;;  %v1620_v25 = vmul.f32 %v3243_v22, %v2958_v31  ;;  %v1632_v5 = vmul.f32 %v3309_v8, %v3170_v1  ;;  %v1685_v1 = vmul.f32 %v3257_v12, %v3570_v44 }
 0x330   : > { %v1569_v36 = vmul.f32 %v3311_v29, %v3144_v39  ;;  %v1621_v39 = vmul.f32 %v3257_v12, %v2945_v10  ;;  %v3566_v10 = vld [vmem:[#allocation19_spill] sm:$0xff]  ;;  %v1633_v51 = vmul.f32 %v3311_v29, %v3154_v42  ;;  %v3572_v42 = vld [vmem:[#allocation12_spill] sm:$0xff] }
 0x331   : > { %1594 = vadd.xlane.f32.xlu1 %v1567_v19  ;;  %1596 = vadd.xlane.f32.xlu0 %v1568_v41  ;;  %v1627_v52 = vmul.f32 %v3287_v48, %v3566_v10  ;;  %v3576_v12 = vld [vmem:[#allocation20_spill] sm:$0xff]  ;;  %v1692_v19 = vmul.f32 %v3293_v7, %v3577_v34  ;;  %v1695_v41 = vmul.f32 %v3303_v40, %v3579_v28 }
 0x332   : > { %v3317_v33 = vpop.eup %2355  ;;  %v1691_v46 = vmul.f32 %v3287_v48, %v3576_v12  ;;  %v1696_v48 = vmul.f32 %v3309_v8, %v3179_v23  ;;  %v1697_v7 = vmul.f32 %v3311_v29, %v3162_v2 }
 0x333   : > { %v3319_v0 = vpop.eup %2357  ;;  %v1570_v13 = vmul.f32 %v3317_v33, %v3185_v21  ;;  %v1623_v21 = vmul.f32 %v3259_v14, %v3562_v11  ;;  %v1634_v9 = vmul.f32 %v3317_v33, %v3189_v59  ;;  %v1687_v59 = vmul.f32 %v3259_v14, %v3572_v42  ;;  %v3578_v14 = vld [vmem:[#allocation24_spill] sm:$0xff] }
 0x334   : > { %v1571_v56 = vmul.f32 %v3319_v0, %v3165_v3  ;;  %v3564_v3 = vld [vmem:[#allocation14_spill] sm:$0xff]  ;;  %v1635_v32 = vmul.f32 %v3319_v0, %v3175_v26  ;;  %v3574_v26 = vld [vmem:[#allocation16_spill] sm:$0xff]  ;;  %v1693_v49 = vmul.f32 %v3295_v38, %v3578_v14  ;;  %v1699_v38 = vmul.f32 %v3319_v0, %v3182_v60 }
 0x335   : > { %1598 = vadd.xlane.f32.xlu1 %v1569_v36  ;;  %1600 = vadd.xlane.f32.xlu0 %v1570_v13  ;;  %v1625_v31 = vmul.f32 %v3273_v54, %v3564_v3  ;;  %v1689_v22 = vmul.f32 %v3273_v54, %v3574_v26  ;;  %v1694_v54 = vmul.f32 %v3301_v47, %v3151_v53 }
 0x336   : > { %v1698_v53 = vmul.f32 %v3317_v33, %v3192_v37 }
 0x339   : > { %1602 = vadd.xlane.f32.xlu1 %v1571_v56  ;;  %1636 = vadd.xlane.f32.xlu0 %v1620_v25 }
 0x33d   : > { %1638 = vadd.xlane.f32.xlu1 %v1621_v39  ;;  %1640 = vadd.xlane.f32.xlu0 %v1622_v4 }
 0x341   : > { %1642 = vadd.xlane.f32.xlu1 %v1623_v21  ;;  %1644 = vadd.xlane.f32.xlu0 %v1624_v15 }
 0x345   : > { %1646 = vadd.xlane.f32.xlu1 %v1625_v31  ;;  %1648 = vadd.xlane.f32.xlu0 %v1626_v35 }
 0x349   : > { %1650 = vadd.xlane.f32.xlu1 %v1627_v52  ;;  %1652 = vadd.xlane.f32.xlu0 %v1628_v27 }
 0x34d   : > { %1654 = vadd.xlane.f32.xlu1 %v1629_v6  ;;  %1656 = vadd.xlane.f32.xlu0 %v1630_v57 }
 0x351   : > { %1658 = vadd.xlane.f32.xlu1 %v1631_v62  ;;  %1660 = vadd.xlane.f32.xlu0 %v1632_v5 }
 0x355   : > { %1662 = vadd.xlane.f32.xlu1 %v1633_v51  ;;  %1664 = vadd.xlane.f32.xlu0 %v1634_v9 }
 0x359   : > { %1666 = vadd.xlane.f32.xlu1 %v1635_v32  ;;  %1700 = vadd.xlane.f32.xlu0 %v1684_v17 }
 0x35d   : > { %1702 = vadd.xlane.f32.xlu1 %v1685_v1  ;;  %1704 = vadd.xlane.f32.xlu0 %v1686_v55 }
 0x361   : > { %1706 = vadd.xlane.f32.xlu1 %v1687_v59  ;;  %1708 = vadd.xlane.f32.xlu0 %v1688_v43 }
 0x365   : > { %1710 = vadd.xlane.f32.xlu1 %v1689_v22  ;;  %1712 = vadd.xlane.f32.xlu0 %v1690_v30 }
 0x369   : > { %1714 = vadd.xlane.f32.xlu1 %v1691_v46  ;;  %1716 = vadd.xlane.f32.xlu0 %v1692_v19 }
 0x36d   : > { %1718 = vadd.xlane.f32.xlu1 %v1693_v49  ;;  %1720 = vadd.xlane.f32.xlu0 %v1694_v54 }
 0x371   : > { %1722 = vadd.xlane.f32.xlu1 %v1695_v41  ;;  %1724 = vadd.xlane.f32.xlu0 %v1696_v48 }
 0x375   : > { %1726 = vadd.xlane.f32.xlu1 %v1697_v7  ;;  %1728 = vadd.xlane.f32.xlu0 %v1698_v53 }
 0x379   : > { %1730 = vadd.xlane.f32.xlu1 %v1699_v38 }
 0x3a2   : > { %v1573_v47 = vpop.xlane.xlu0 %1572 }
 0x3a3   : > { %1604 = vst.msk [vmem:[%s2561_s16] sm:$0xff] %vm1539_vm2, %v1573_v47 }
 0x3a6   : > { %v1575_v23 = vpop.xlane.xlu1 %1574  ;;  %v1577_v40 = vpop.xlane.xlu0 %1576 }
 0x3a7   : > { %1605 = vst.msk [vmem:[%s2561_s16 + $0x8] sm:$0xff] %vm1539_vm2, %v1575_v23  ;;  %1606 = vst.msk [vmem:[%s2561_s16 + $0x10] sm:$0xff] %vm1539_vm2, %v1577_v40 }
 0x3aa   : > { %v1579_v2 = vpop.xlane.xlu1 %1578  ;;  %v1581_v37 = vpop.xlane.xlu0 %1580 }
 0x3ab   : > { %1607 = vst.msk [vmem:[%s2561_s16 + $0x18] sm:$0xff] %vm1539_vm2, %v1579_v2  ;;  %1608 = vst.msk [vmem:[%s2561_s16 + $0x20] sm:$0xff] %vm1539_vm2, %v1581_v37 }
 0x3ae   : > { %v1583_v60 = vpop.xlane.xlu1 %1582  ;;  %v1585_v8 = vpop.xlane.xlu0 %1584 }
 0x3af   : > { %1609 = vst.msk [vmem:[%s2561_s16 + $0x28] sm:$0xff] %vm1539_vm2, %v1583_v60  ;;  %1610 = vst.msk [vmem:[%s2561_s16 + $0x30] sm:$0xff] %vm1539_vm2, %v1585_v8 }
 0x3b2   : > { %v1587_v29 = vpop.xlane.xlu1 %1586  ;;  %v1589_v36 = vpop.xlane.xlu0 %1588 }
 0x3b3   : > { %1611 = vst.msk [vmem:[%s2561_s16 + $0x38] sm:$0xff] %vm1539_vm2, %v1587_v29  ;;  %1612 = vst.msk [vmem:[%s2561_s16 + $0x40] sm:$0xff] %vm1539_vm2, %v1589_v36 }
 0x3b6   : > { %v1591_v33 = vpop.xlane.xlu1 %1590  ;;  %v1593_v0 = vpop.xlane.xlu0 %1592 }
 0x3b7   : > { %1613 = vst.msk [vmem:[%s2561_s16 + $0x48] sm:$0xff] %vm1539_vm2, %v1591_v33  ;;  %1614 = vst.msk [vmem:[%s2561_s16 + $0x50] sm:$0xff] %vm1539_vm2, %v1593_v0 }
 0x3ba   : > { %v1595_v13 = vpop.xlane.xlu1 %1594  ;;  %v1597_v56 = vpop.xlane.xlu0 %1596 }
 0x3bb   : > { %1615 = vst.msk [vmem:[%s2561_s16 + $0x58] sm:$0xff] %vm1539_vm2, %v1595_v13  ;;  %1616 = vst.msk [vmem:[%s2561_s16 + $0x60] sm:$0xff] %vm1539_vm2, %v1597_v56 }
 0x3be   : > { %v1599_v25 = vpop.xlane.xlu1 %1598  ;;  %v1601_v39 = vpop.xlane.xlu0 %1600 }
 0x3bf   : > { %1617 = vst.msk [vmem:[%s2561_s16 + $0x68] sm:$0xff] %vm1539_vm2, %v1599_v25  ;;  %1618 = vst.msk [vmem:[%s2561_s16 + $0x70] sm:$0xff] %vm1539_vm2, %v1601_v39 }
 0x3c2   : > { %v1603_v24 = vpop.xlane.xlu1 %1602  ;;  %v1637_v4 = vpop.xlane.xlu0 %1636 }
 0x3c3   : > { %1619 = vst.msk [vmem:[%s2561_s16 + $0x78] sm:$0xff] %vm1539_vm2, %v1603_v24  ;;  %1668 = vst.msk [vmem:[%s2566_s0] sm:$0xff] %vm1539_vm2, %v1637_v4 }
 0x3c6   : > { %v1639_v11 = vpop.xlane.xlu1 %1638  ;;  %v1641_v21 = vpop.xlane.xlu0 %1640 }
 0x3c7   : > { %1669 = vst.msk [vmem:[%s2566_s0 + $0x8] sm:$0xff] %vm1539_vm2, %v1639_v11  ;;  %1670 = vst.msk [vmem:[%s2566_s0 + $0x10] sm:$0xff] %vm1539_vm2, %v1641_v21 }
 0x3ca   : > { %v1643_v58 = vpop.xlane.xlu1 %1642  ;;  %v1645_v15 = vpop.xlane.xlu0 %1644 }
 0x3cb   : > { %1671 = vst.msk [vmem:[%s2566_s0 + $0x18] sm:$0xff] %vm1539_vm2, %v1643_v58  ;;  %1672 = vst.msk [vmem:[%s2566_s0 + $0x20] sm:$0xff] %vm1539_vm2, %v1645_v15 }
 0x3ce   : > { %v1647_v3 = vpop.xlane.xlu1 %1646  ;;  %v1649_v31 = vpop.xlane.xlu0 %1648 }
 0x3cf   : > { %1673 = vst.msk [vmem:[%s2566_s0 + $0x28] sm:$0xff] %vm1539_vm2, %v1647_v3  ;;  %1674 = vst.msk [vmem:[%s2566_s0 + $0x30] sm:$0xff] %vm1539_vm2, %v1649_v31 }
 0x3d2   : > { %v1651_v16 = vpop.xlane.xlu1 %1650  ;;  %v1653_v35 = vpop.xlane.xlu0 %1652 }
 0x3d3   : > { %1675 = vst.msk [vmem:[%s2566_s0 + $0x38] sm:$0xff] %vm1539_vm2, %v1651_v16  ;;  %1676 = vst.msk [vmem:[%s2566_s0 + $0x40] sm:$0xff] %vm1539_vm2, %v1653_v35 }
 0x3d6   : > { %v1655_v10 = vpop.xlane.xlu1 %1654  ;;  %v1657_v52 = vpop.xlane.xlu0 %1656 }
 0x3d7   : > { %1677 = vst.msk [vmem:[%s2566_s0 + $0x48] sm:$0xff] %vm1539_vm2, %v1655_v10  ;;  %1678 = vst.msk [vmem:[%s2566_s0 + $0x50] sm:$0xff] %vm1539_vm2, %v1657_v52 }
 0x3da   : > { %v1659_v45 = vpop.xlane.xlu1 %1658  ;;  %v1661_v27 = vpop.xlane.xlu0 %1660 }
 0x3db   : > { %1679 = vst.msk [vmem:[%s2566_s0 + $0x58] sm:$0xff] %vm1539_vm2, %v1659_v45  ;;  %1680 = vst.msk [vmem:[%s2566_s0 + $0x60] sm:$0xff] %vm1539_vm2, %v1661_v27 }
 0x3de   : > { %v1663_v63 = vpop.xlane.xlu1 %1662  ;;  %v1665_v6 = vpop.xlane.xlu0 %1664 }
 0x3df   : > { %1681 = vst.msk [vmem:[%s2566_s0 + $0x68] sm:$0xff] %vm1539_vm2, %v1663_v63  ;;  %1682 = vst.msk [vmem:[%s2566_s0 + $0x70] sm:$0xff] %vm1539_vm2, %v1665_v6 }
 0x3e2   : > { %v1667_v57 = vpop.xlane.xlu1 %1666  ;;  %v1701_v62 = vpop.xlane.xlu0 %1700 }
 0x3e3   : > { %1683 = vst.msk [vmem:[%s2566_s0 + $0x78] sm:$0xff] %vm1539_vm2, %v1667_v57  ;;  %1732 = vst.msk [vmem:[%s2571_s17] sm:$0xff] %vm1539_vm2, %v1701_v62 }
 0x3e6   : > { %v1703_v5 = vpop.xlane.xlu1 %1702  ;;  %v1705_v51 = vpop.xlane.xlu0 %1704 }
 0x3e7   : > { %1733 = vst.msk [vmem:[%s2571_s17 + $0x8] sm:$0xff] %vm1539_vm2, %v1703_v5  ;;  %1734 = vst.msk [vmem:[%s2571_s17 + $0x10] sm:$0xff] %vm1539_vm2, %v1705_v51 }
 0x3ea   : > { %v1707_v9 = vpop.xlane.xlu1 %1706  ;;  %v1709_v32 = vpop.xlane.xlu0 %1708 }
 0x3eb   : > { %1735 = vst.msk [vmem:[%s2571_s17 + $0x18] sm:$0xff] %vm1539_vm2, %v1707_v9  ;;  %1736 = vst.msk [vmem:[%s2571_s17 + $0x20] sm:$0xff] %vm1539_vm2, %v1709_v32 }
 0x3ee   : > { %v1711_v50 = vpop.xlane.xlu1 %1710  ;;  %v1713_v17 = vpop.xlane.xlu0 %1712 }
 0x3ef   : > { %1737 = vst.msk [vmem:[%s2571_s17 + $0x28] sm:$0xff] %vm1539_vm2, %v1711_v50  ;;  %1738 = vst.msk [vmem:[%s2571_s17 + $0x30] sm:$0xff] %vm1539_vm2, %v1713_v17 }
 0x3f2   : > { %v1715_v44 = vpop.xlane.xlu1 %1714  ;;  %v1717_v1 = vpop.xlane.xlu0 %1716 }
 0x3f3   : > { %1739 = vst.msk [vmem:[%s2571_s17 + $0x38] sm:$0xff] %vm1539_vm2, %v1715_v44  ;;  %1740 = vst.msk [vmem:[%s2571_s17 + $0x40] sm:$0xff] %vm1539_vm2, %v1717_v1 }
 0x3f6   : > { %v1719_v18 = vpop.xlane.xlu1 %1718  ;;  %v1721_v55 = vpop.xlane.xlu0 %1720 }
 0x3f7   : > { %1741 = vst.msk [vmem:[%s2571_s17 + $0x48] sm:$0xff] %vm1539_vm2, %v1719_v18  ;;  %1742 = vst.msk [vmem:[%s2571_s17 + $0x50] sm:$0xff] %vm1539_vm2, %v1721_v55 }
 0x3fa   : > { %v1723_v42 = vpop.xlane.xlu1 %1722  ;;  %v1725_v59 = vpop.xlane.xlu0 %1724 }
 0x3fb   : > { %1743 = vst.msk [vmem:[%s2571_s17 + $0x58] sm:$0xff] %vm1539_vm2, %v1723_v42  ;;  %1744 = vst.msk [vmem:[%s2571_s17 + $0x60] sm:$0xff] %vm1539_vm2, %v1725_v59 }
 0x3fe   : > { %v1727_v20 = vpop.xlane.xlu1 %1726  ;;  %v1729_v43 = vpop.xlane.xlu0 %1728 }
 0x3ff   : > { %1745 = vst.msk [vmem:[%s2571_s17 + $0x68] sm:$0xff] %vm1539_vm2, %v1727_v20  ;;  %1746 = vst.msk [vmem:[%s2571_s17 + $0x70] sm:$0xff] %vm1539_vm2, %v1729_v43 }
 0x402   : > { %v1731_v26 = vpop.xlane.xlu1 %1730 }
 0x403   : > { %1747 = vst.msk [vmem:[%s2571_s17 + $0x78] sm:$0xff] %vm1539_vm2, %v1731_v26 }
 0x404 PF: > { %s19_s11 = sadd.s32 1, %s2413_s11   ;;  %s3580_s0 = sld [smem:[#allocation7_spill]] }
 0x405   : > { %p16_p1 = scmp.ge.s32.totalorder %s19_s11, 8   ;;  %s3581_s25 = sld [smem:[#allocation8_spill]] }
 0x406   : > { %s3582_s27 = smov %s2393_s28  ;;  %s3583_s28 = smov %s2517_s20 }
 0x407   : > { %s3584_s29 = smov %s2405_s9  ;;  %s3585_s30 = smov %s2409_s10 }
 0x408   :  { %18 = sbr.rel (!%p16_p1) target bundleno = 6 (0x6), region = 160 }
 0x40a   : > { %s3586_s9 = smov %s3580_s0 }
 0x40b   : > { %s3587_s10 = smov %s3581_s25 }

</bundles_post_ra>
